<compile_context>
chip_gen: v6e
topology: v6e:2x2x1
jax: 0.10.0
libtpu: 0.0.40
codegen_flags: <defaults>
</compile_context>

<pallas_src>
import numpy as np
import jax
import jax.numpy as jnp
from jax.experimental import pallas as pl
from jax.experimental.pallas import tpu as pltpu

CONV_CH = 64                               # conv channels per block (module spec)
H1, H2, H3, H4 = 100, 100, 200, 200        # torch hidden sizes
H1P, H2P, H3P, H4P = 128, 128, 256, 256    # lane-dense padded hidden sizes
_BN_EPS = 1e-5


def _round_up(x, m):
    return ((x + m - 1) // m) * m


def _choose_tn(out_dim, max_resident=8192):
    """Lane-dense tile width for the final (hypernetwork) layer.

    If the 128-padded out_dim is small enough to keep the whole bf16 weight
    resident (<= H4P * 8192 * 2B = 4 MiB), use a single tile (grid of 1).
    Otherwise stream 2048-wide tiles (double-buffered by BlockSpec)."""
    p128 = _round_up(out_dim, 128)
    return p128 if p128 <= max_resident else 2048


# ---------------------------------------------------------------------------
# Kernel 1: fused conv(3x3,'same') + batch-norm + ReLU + maxpool(2x2)
#   patches_ref : (4, N, K)  axis0 = the 4 positions inside each 2x2 pool window
#                            N = B*(H/2)*(W/2), K = 9*C_in padded to mult of 128
#   w_ref       : (K, C_out) conv weight as an im2col GEMM matrix
#   b/gamma/beta: (1, C_out)
#   out_ref     : (N, C_out)
# ---------------------------------------------------------------------------
def _conv_bn_relu_pool_kernel(patches_ref, w_ref, b_ref, gamma_ref, beta_ref,
                              out_ref):
    w = w_ref[...]
    b = b_ref[...]
    # conv as a GEMM for each of the 4 pool-window positions
    z = [jnp.dot(patches_ref[p], w, preferred_element_type=jnp.float32) + b
         for p in range(4)]
    n_rows = 4 * z[0].shape[0]                       # = B*H*W spatial positions

    # batch-norm with batch statistics (track_running_stats=False), biased var
    total = z[0] + z[1] + z[2] + z[3]
    mean = jnp.sum(total, axis=0, keepdims=True) / n_rows              # (1, C)
    sq = ((z[0] - mean) ** 2 + (z[1] - mean) ** 2 +
          (z[2] - mean) ** 2 + (z[3] - mean) ** 2)
    var = jnp.sum(sq, axis=0, keepdims=True) / n_rows
    scale = gamma_ref[...] * jax.lax.rsqrt(var + _BN_EPS)
    shift = beta_ref[...] - mean * scale

    # ReLU then 2x2 max-pool (elementwise max over the 4 window positions)
    y = [jnp.maximum(z[p] * scale + shift, 0.0) for p in range(4)]
    out_ref[...] = jnp.maximum(jnp.maximum(y[0], y[1]),
                               jnp.maximum(y[2], y[3]))


def _conv_block_call(patches, w, b, gamma, beta):
    # Whole block fits VMEM at the meta-learning task sizes this module targets.
    # TODO(synk): for very large B*H*W, tile N with a 2-pass (stats, apply) grid.
    n = patches.shape[1]
    c_out = w.shape[1]
    vmem = pl.BlockSpec(memory_space=pltpu.MemorySpace.VMEM)
    return pl.pallas_call(
        _conv_bn_relu_pool_kernel,
        out_shape=jax.ShapeDtypeStruct((n, c_out), jnp.float32),
        in_specs=[vmem] * 5,
        out_specs=vmem,
    )(patches, w, b, gamma, beta)


def _im2col_pool_groups(x, k_pad):
    """(B,H,W,C) NHWC -> (4, B*(H//2)*(W//2), k_pad) im2col patches grouped by
    position inside each 2x2 max-pool window.  Pure layout plumbing (wrapper)."""
    b, h, w, c = x.shape
    xp = jnp.pad(x, ((0, 0), (1, 1), (1, 1), (0, 0)))            # 'same' padding
    cols = jnp.concatenate(
        [xp[:, dy:dy + h, dx:dx + w, :] for dy in range(3) for dx in range(3)],
        axis=-1)                                                 # (B, H, W, 9C)
    ho, wo = h // 2, w // 2
    groups = jnp.stack(
        [cols[:, ph::2, pw::2, :] for ph in range(2) for pw in range(2)],
        axis=0)                                                  # (4,B,Ho,Wo,9C)
    groups = groups.reshape(4, b * ho * wo, 9 * c)
    if k_pad > 9 * c:
        groups = jnp.pad(groups, ((0, 0), (0, 0), (0, k_pad - 9 * c)))
    return groups


# ---------------------------------------------------------------------------
# Kernel 2: MLP head, final layer tiled over out_dim (1-D "parallel" grid)
# ---------------------------------------------------------------------------
def _mlp_kernel(x_ref, w1, b1, w2, b2, w3, b3, w4, b4, w5, b5, out_ref):
    # Hidden stack is tiny & fully VMEM-resident (constant index maps); it is
    # recomputed per out_dim tile (~0.3 MFLOP) so the grid axis can stay
    # "parallel" (sharded across v7x's 2 TensorCores) with no cross-step state.
    # When out_dim is small the grid has a single step, so it runs exactly once.
    x = x_ref[...]
    h = jnp.maximum(jnp.dot(x, w1[...], preferred_element_type=jnp.float32) + b1[...], 0.0)
    h = jnp.maximum(jnp.dot(h, w2[...], preferred_element_type=jnp.float32) + b2[...], 0.0)
    h = jnp.maximum(jnp.dot(h, w3[...], preferred_element_type=jnp.float32) + b3[...], 0.0)
    h = jnp.mean(h, axis=0, keepdims=True)                  # torch.mean(x, dim=0)
    h = jnp.maximum(jnp.dot(h, w4[...], preferred_element_type=jnp.float32) + b4[...], 0.0)
    # final hypernetwork layer: bf16 weight tile streamed from HBM, f32 accumulate
    out_ref[...] = (jnp.dot(h.astype(jnp.bfloat16), w5[...],
                            preferred_element_type=jnp.float32) + b5[...])


def _mlp_call(feat, mlp, tn):
    b, f = feat.shape
    out_pad = mlp["w5"].shape[1]
    assert tn % 128 == 0 and out_pad % tn == 0
    grid = (out_pad // tn,)

    def const(shape):
        return pl.BlockSpec(shape, lambda j: (0, 0))       # VMEM-resident block

    return pl.pallas_call(
        _mlp_kernel,
        out_shape=jax.ShapeDtypeStruct((1, out_pad), jnp.float32),
        grid=grid,
        in_specs=[
            const((b, f)),
            const(mlp["w1"].shape), const(mlp["b1"].shape),
            const(mlp["w2"].shape), const(mlp["b2"].shape),
            const(mlp["w3"].shape), const(mlp["b3"].shape),
            const(mlp["w4"].shape), const(mlp["b4"].shape),
            pl.BlockSpec((H4P, tn), lambda j: (0, j)),      # w5 tile (streams)
            pl.BlockSpec((1, tn), lambda j: (0, j)),        # b5 tile
        ],
        out_specs=pl.BlockSpec((1, tn), lambda j: (0, j)),  # lane-dense output
        compiler_params=pltpu.CompilerParams(
            dimension_semantics=("parallel",)),
    )(feat, mlp["w1"], mlp["b1"], mlp["w2"], mlp["b2"], mlp["w3"], mlp["b3"],
      mlp["w4"], mlp["b4"], mlp["w5"], mlp["b5"])


# ---------------------------------------------------------------------------
# Parameters (deterministic init mimicking torch defaults U(-1/sqrt(fan_in),..))
# ---------------------------------------------------------------------------
def init_params(key, in_channels, feat_dim, out_dim, tn):
    def pad_to(a, shape):
        z = jnp.zeros(shape, a.dtype)
        return z.at[tuple(slice(0, s) for s in a.shape)].set(a)

    keys = iter(jax.random.split(key, 16))

    conv_blocks = []
    cin = in_channels
    for _ in range(3):
        fan_in = 9 * cin
        bound = 1.0 / np.sqrt(fan_in)
        w_hwio = jax.random.uniform(next(keys), (3, 3, cin, CONV_CH),
                                    jnp.float32, -bound, bound)
        bias = jax.random.uniform(next(keys), (1, CONV_CH),
                                  jnp.float32, -bound, bound)
        k_pad = _round_up(9 * cin, 128)        # lane-dense GEMM contraction dim
        conv_blocks.append(dict(
            w_hwio=w_hwio,
            w=pad_to(w_hwio.reshape(9 * cin, CONV_CH), (k_pad, CONV_CH)),
            b=bias,
            gamma=jnp.ones((1, CONV_CH), jnp.float32),
            beta=jnp.zeros((1, CONV_CH), jnp.float32),
        ))
        cin = CONV_CH

    def lin(k, fi, fo):
        kw, kb = jax.random.split(k)
        bound = 1.0 / np.sqrt(fi)
        return (jax.random.uniform(kw, (fi, fo), jnp.float32, -bound, bound),
                jax.random.uniform(kb, (1, fo), jnp.float32, -bound, bound))

    w1, b1 = lin(next(keys), feat_dim, H1)   # LazyLinear materialized at feat_dim
    w2, b2 = lin(next(keys), H1, H2)
    w3, b3 = lin(next(keys), H2, H3)
    w4, b4 = lin(next(keys), H3, H4)
    w5, b5 = lin(next(keys), H4, out_dim)

    out_pad = _round_up(out_dim, tn)
    mlp = dict(
        w1=pad_to(w1, (feat_dim, H1P)), b1=pad_to(b1, (1, H1P)),
        w2=pad_to(w2, (H1P, H2P)),      b2=pad_to(b2, (1, H2P)),
        w3=pad_to(w3, (H2P, H3P)),      b3=pad_to(b3, (1, H3P)),
        w4=pad_to(w4, (H3P, H4P)),      b4=pad_to(b4, (1, H4P)),
        # only the big, memory-bound final weight goes bf16 (f32 accumulation)
        w5=pad_to(w5.astype(jnp.bfloat16), (H4P, out_pad)),
        b5=pad_to(b5, (1, out_pad)),
    )
    return dict(conv_blocks=conv_blocks, mlp=mlp)


# ---------------------------------------------------------------------------
# Forward pass (matches TaskEncoderComplex.forward)
# ---------------------------------------------------------------------------
def task_encoder_complex(x_sp, x_qr, params, out_shapes, tn):
    out_dims = [int(np.prod(s)) for s in out_shapes]
    out_dim = int(np.sum(out_dims))

    x = jnp.concatenate([x_sp, x_qr], axis=0)          # torch.cat(dim=0), NCHW
    x = jnp.transpose(x, (0, 2, 3, 1))                 # NHWC: channels on lanes

    for blk in params["conv_blocks"]:
        b, h, w, _ = x.shape
        assert h % 2 == 0 and w % 2 == 0, "MaxPool2d(2,2) needs even spatial dims"
        patches = _im2col_pool_groups(x, blk["w"].shape[0])
        y = _conv_block_call(patches, blk["w"], blk["b"], blk["gamma"], blk["beta"])
        x = y.reshape(b, h // 2, w // 2, CONV_CH)

    b = x.shape[0]
    feat = jnp.transpose(x, (0, 3, 1, 2)).reshape(b, -1)   # torch Flatten (NCHW order)

    flat = _mlp_call(feat, params["mlp"], tn).reshape(-1)[:out_dim]

    outs, off = [], 0                                  # x.split(out_dims) + view
    for shape, d in zip(out_shapes, out_dims):
        outs.append(flat[off:off + d].reshape(shape))
        off += d
    return outs


# ---------------------------------------------------------------------------
# Plain-JAX reference (uses the unpadded weight slices, independent conv path)
# ---------------------------------------------------------------------------
def _reference(x_sp, x_qr, params, out_shapes):
    hi = jax.lax.Precision.HIGHEST
    out_dims = [int(np.prod(s)) for s in out_shapes]
    out_dim = int(np.sum(out_dims))

    x = jnp.concatenate([x_sp, x_qr], axis=0)
    x = jnp.transpose(x, (0, 2, 3, 1))
    for blk in params["conv_blocks"]:
        y = jax.lax.conv_general_dilated(
            x, blk["w_hwio"], (1, 1), "SAME",
            dimension_numbers=("NHWC", "HWIO", "NHWC"), precision=hi)
        y = y + blk["b"].reshape(1, 1, 1, -1)
        mean = jnp.mean(y, axis=(0, 1, 2), keepdims=True)
        var = jnp.mean((y - mean) ** 2, axis=(0, 1, 2), keepdims=True)
        y = ((y - mean) * jax.lax.rsqrt(var + _BN_EPS)
             * blk["gamma"].reshape(1, 1, 1, -1) + blk["beta"].reshape(1, 1, 1, -1))
        y = jnp.maximum(y, 0.0)
        x = jax.lax.reduce_window(y, -jnp.inf, jax.lax.max,
                                  (1, 2, 2, 1), (1, 2, 2, 1), "VALID")

    b = x.shape[0]
    feat = jnp.transpose(x, (0, 3, 1, 2)).reshape(b, -1)

    m = params["mlp"]
    w1, b1 = m["w1"][:, :H1], m["b1"][:, :H1]
    w2, b2 = m["w2"][:H1, :H2], m["b2"][:, :H2]
    w3, b3 = m["w3"][:H2, :H3], m["b3"][:, :H3]
    w4, b4 = m["w4"][:H3, :H4], m["b4"][:, :H4]
    w5, b5 = m["w5"][:H4, :out_dim], m["b5"][:, :out_dim]

    h = jnp.maximum(jnp.dot(feat, w1, precision=hi) + b1, 0.0)
    h = jnp.maximum(jnp.dot(h, w2, precision=hi) + b2, 0.0)
    h = jnp.maximum(jnp.dot(h, w3, precision=hi) + b3, 0.0)
    h = jnp.mean(h, axis=0, keepdims=True)
    h = jnp.maximum(jnp.dot(h, w4, precision=hi) + b4, 0.0)
    flat = (jnp.dot(h.astype(jnp.bfloat16), w5,
                    preferred_element_type=jnp.float32) + b5).reshape(-1)

    outs, off = [], 0
    for shape, d in zip(out_shapes, out_dims):
        outs.append(flat[off:off + d].reshape(shape))
        off += d
    return outs


if __name__ == "__main__":
    # Small deterministic example consistent with the module:
    #   support/query images (1+1, 3, 16, 16)  ->  conv features (2, 64, 2, 2)
    #   hypernetwork out_shapes totalling out_dim = 4112
    b_sp, b_qr, cin, hh, ww = 1, 1, 3, 16, 16
    out_shapes = [(64, 32), (64,), (10, 200)]
    out_dim = int(np.sum([int(np.prod(s)) for s in out_shapes]))
    feat_dim = CONV_CH * (hh // 8) * (ww // 8)

    # Lane-dense out_dim tile: a single VMEM-resident tile (grid=1) when out_dim
    # is small; 2048-wide streamed tiles for genuinely large hypernetwork heads.
    tn = _choose_tn(out_dim)

    key = jax.random.PRNGKey(0)
    k_sp, k_qr, k_par = jax.random.split(key, 3)
    x_sp = jax.random.normal(k_sp, (b_sp, cin, hh, ww), jnp.float32)
    x_qr = jax.random.normal(k_qr, (b_qr, cin, hh, ww), jnp.float32)
    params = init_params(k_par, cin, feat_dim, out_dim, tn)

    outs = task_encoder_complex(x_sp, x_qr, params, out_shapes, tn)
    outs = jax.block_until_ready(outs)

    refs = jax.block_until_ready(_reference(x_sp, x_qr, params, out_shapes))
    for o, r, s in zip(outs, refs, out_shapes):
        assert o.shape == tuple(s), (o.shape, s)
        # loose tolerance: bf16 final layer + MXU f32 precision differences
        np.testing.assert_allclose(np.asarray(o, np.float32),
                                   np.asarray(r, np.float32),
                                   rtol=2e-2, atol=2e-2)

    print("KERNEL_OK")
</pallas_src>

<mosaic_0001>
module attributes {stable_mosaic.version = 11 : i64} {
  func.func @_conv_bn_relu_pool_kernel(%arg0: memref<4x128x128xf32, #tpu.memory_space<vmem>>, %arg1: memref<128x64xf32, #tpu.memory_space<vmem>>, %arg2: memref<1x64xf32, #tpu.memory_space<vmem>>, %arg3: memref<1x64xf32, #tpu.memory_space<vmem>>, %arg4: memref<1x64xf32, #tpu.memory_space<vmem>>, %arg5: memref<128x64xf32, #tpu.memory_space<vmem>>) attributes {dimension_semantics = [], scalar_prefetch = 0 : i64, scratch_operands = 0 : i64, tpu.core_type = #tpu.core_type<tc>} {
    %c0 = arith.constant 0 : index
    %c0_0 = arith.constant 0 : index
    %0 = vector.load %arg1[%c0, %c0_0] : memref<128x64xf32, #tpu.memory_space<vmem>>, vector<128x64xf32>
    %c0_1 = arith.constant 0 : index
    %c0_2 = arith.constant 0 : index
    %1 = vector.load %arg2[%c0_1, %c0_2] : memref<1x64xf32, #tpu.memory_space<vmem>>, vector<1x64xf32>
    %c0_3 = arith.constant 0 : index
    %c0_4 = arith.constant 0 : index
    %c0_5 = arith.constant 0 : index
    %2 = vector.load %arg0[%c0_3, %c0_4, %c0_5] : memref<4x128x128xf32, #tpu.memory_space<vmem>>, vector<1x128x128xf32>
    %3 = vector.shape_cast %2 : vector<1x128x128xf32> to vector<128x128xf32>
    %cst = arith.constant dense<0.000000e+00> : vector<128x64xf32>
    %4 = tpu.matmul %3, %0, %cst {dimension_numbers = #tpu.dot_dimension_numbers<[1], [0], [0], [1], [0, 0, 1, 1], [], []>} : vector<128x128xf32>, vector<128x64xf32>, vector<128x64xf32> -> vector<128x64xf32>
    %5 = vector.broadcast %1 : vector<1x64xf32> to vector<128x64xf32>
    %6 = arith.addf %4, %5 : vector<128x64xf32>
    %c1 = arith.constant 1 : index
    %c0_6 = arith.constant 0 : index
    %c0_7 = arith.constant 0 : index
    %7 = vector.load %arg0[%c1, %c0_6, %c0_7] : memref<4x128x128xf32, #tpu.memory_space<vmem>>, vector<1x128x128xf32>
    %8 = vector.shape_cast %7 : vector<1x128x128xf32> to vector<128x128xf32>
    %cst_8 = arith.constant dense<0.000000e+00> : vector<128x64xf32>
    %9 = tpu.matmul %8, %0, %cst_8 {dimension_numbers = #tpu.dot_dimension_numbers<[1], [0], [0], [1], [0, 0, 1, 1], [], []>} : vector<128x128xf32>, vector<128x64xf32>, vector<128x64xf32> -> vector<128x64xf32>
    %10 = vector.broadcast %1 : vector<1x64xf32> to vector<128x64xf32>
    %11 = arith.addf %9, %10 : vector<128x64xf32>
    %c2 = arith.constant 2 : index
    %c0_9 = arith.constant 0 : index
    %c0_10 = arith.constant 0 : index
    %12 = vector.load %arg0[%c2, %c0_9, %c0_10] : memref<4x128x128xf32, #tpu.memory_space<vmem>>, vector<1x128x128xf32>
    %13 = vector.shape_cast %12 : vector<1x128x128xf32> to vector<128x128xf32>
    %cst_11 = arith.constant dense<0.000000e+00> : vector<128x64xf32>
    %14 = tpu.matmul %13, %0, %cst_11 {dimension_numbers = #tpu.dot_dimension_numbers<[1], [0], [0], [1], [0, 0, 1, 1], [], []>} : vector<128x128xf32>, vector<128x64xf32>, vector<128x64xf32> -> vector<128x64xf32>
    %15 = vector.broadcast %1 : vector<1x64xf32> to vector<128x64xf32>
    %16 = arith.addf %14, %15 : vector<128x64xf32>
    %c3 = arith.constant 3 : index
    %c0_12 = arith.constant 0 : index
    %c0_13 = arith.constant 0 : index
    %17 = vector.load %arg0[%c3, %c0_12, %c0_13] : memref<4x128x128xf32, #tpu.memory_space<vmem>>, vector<1x128x128xf32>
    %18 = vector.shape_cast %17 : vector<1x128x128xf32> to vector<128x128xf32>
    %cst_14 = arith.constant dense<0.000000e+00> : vector<128x64xf32>
    %19 = tpu.matmul %18, %0, %cst_14 {dimension_numbers = #tpu.dot_dimension_numbers<[1], [0], [0], [1], [0, 0, 1, 1], [], []>} : vector<128x128xf32>, vector<128x64xf32>, vector<128x64xf32> -> vector<128x64xf32>
    %20 = vector.broadcast %1 : vector<1x64xf32> to vector<128x64xf32>
    %21 = arith.addf %19, %20 : vector<128x64xf32>
    %22 = arith.addf %6, %11 : vector<128x64xf32>
    %23 = arith.addf %22, %16 : vector<128x64xf32>
    %24 = arith.addf %23, %21 : vector<128x64xf32>
    %cst_15 = arith.constant dense<0.000000e+00> : vector<64xf32>
    %25 = vector.multi_reduction <add>, %24, %cst_15 [0] : vector<128x64xf32> to vector<64xf32>
    %26 = vector.shape_cast %25 : vector<64xf32> to vector<1x64xf32>
    %cst_16 = arith.constant 5.120000e+02 : f32
    %27 = vector.broadcast %cst_16 : f32 to vector<1x64xf32>
    %28 = arith.divf %26, %27 : vector<1x64xf32>
    %29 = vector.broadcast %28 : vector<1x64xf32> to vector<128x64xf32>
    %30 = arith.subf %6, %29 : vector<128x64xf32>
    %31 = arith.mulf %30, %30 : vector<128x64xf32>
    %32 = vector.broadcast %28 : vector<1x64xf32> to vector<128x64xf32>
    %33 = arith.subf %11, %32 : vector<128x64xf32>
    %34 = arith.mulf %33, %33 : vector<128x64xf32>
    %35 = arith.addf %31, %34 : vector<128x64xf32>
    %36 = vector.broadcast %28 : vector<1x64xf32> to vector<128x64xf32>
    %37 = arith.subf %16, %36 : vector<128x64xf32>
    %38 = arith.mulf %37, %37 : vector<128x64xf32>
    %39 = arith.addf %35, %38 : vector<128x64xf32>
    %40 = vector.broadcast %28 : vector<1x64xf32> to vector<128x64xf32>
    %41 = arith.subf %21, %40 : vector<128x64xf32>
    %42 = arith.mulf %41, %41 : vector<128x64xf32>
    %43 = arith.addf %39, %42 : vector<128x64xf32>
    %cst_17 = arith.constant dense<0.000000e+00> : vector<64xf32>
    %44 = vector.multi_reduction <add>, %43, %cst_17 [0] : vector<128x64xf32> to vector<64xf32>
    %45 = vector.shape_cast %44 : vector<64xf32> to vector<1x64xf32>
    %cst_18 = arith.constant 5.120000e+02 : f32
    %46 = vector.broadcast %cst_18 : f32 to vector<1x64xf32>
    %47 = arith.divf %45, %46 : vector<1x64xf32>
    %c0_19 = arith.constant 0 : index
    %c0_20 = arith.constant 0 : index
    %48 = vector.load %arg3[%c0_19, %c0_20] : memref<1x64xf32, #tpu.memory_space<vmem>>, vector<1x64xf32>
    %cst_21 = arith.constant 9.99999974E-6 : f32
    %49 = vector.broadcast %cst_21 : f32 to vector<1x64xf32>
    %50 = arith.addf %47, %49 : vector<1x64xf32>
    %51 = math.rsqrt %50 : vector<1x64xf32>
    %52 = arith.mulf %48, %51 : vector<1x64xf32>
    %c0_22 = arith.constant 0 : index
    %c0_23 = arith.constant 0 : index
    %53 = vector.load %arg4[%c0_22, %c0_23] : memref<1x64xf32, #tpu.memory_space<vmem>>, vector<1x64xf32>
    %54 = arith.mulf %28, %52 : vector<1x64xf32>
    %55 = arith.subf %53, %54 : vector<1x64xf32>
    %56 = vector.broadcast %52 : vector<1x64xf32> to vector<128x64xf32>
    %57 = arith.mulf %6, %56 : vector<128x64xf32>
    %58 = vector.broadcast %55 : vector<1x64xf32> to vector<128x64xf32>
    %59 = arith.addf %57, %58 : vector<128x64xf32>
    %cst_24 = arith.constant 0.000000e+00 : f32
    %60 = vector.broadcast %cst_24 : f32 to vector<128x64xf32>
    %61 = arith.maximumf %59, %60 : vector<128x64xf32>
    %62 = vector.broadcast %52 : vector<1x64xf32> to vector<128x64xf32>
    %63 = arith.mulf %11, %62 : vector<128x64xf32>
    %64 = vector.broadcast %55 : vector<1x64xf32> to vector<128x64xf32>
    %65 = arith.addf %63, %64 : vector<128x64xf32>
    %cst_25 = arith.constant 0.000000e+00 : f32
    %66 = vector.broadcast %cst_25 : f32 to vector<128x64xf32>
    %67 = arith.maximumf %65, %66 : vector<128x64xf32>
    %68 = vector.broadcast %52 : vector<1x64xf32> to vector<128x64xf32>
    %69 = arith.mulf %16, %68 : vector<128x64xf32>
    %70 = vector.broadcast %55 : vector<1x64xf32> to vector<128x64xf32>
    %71 = arith.addf %69, %70 : vector<128x64xf32>
    %cst_26 = arith.constant 0.000000e+00 : f32
    %72 = vector.broadcast %cst_26 : f32 to vector<128x64xf32>
    %73 = arith.maximumf %71, %72 : vector<128x64xf32>
    %74 = vector.broadcast %52 : vector<1x64xf32> to vector<128x64xf32>
    %75 = arith.mulf %21, %74 : vector<128x64xf32>
    %76 = vector.broadcast %55 : vector<1x64xf32> to vector<128x64xf32>
    %77 = arith.addf %75, %76 : vector<128x64xf32>
    %cst_27 = arith.constant 0.000000e+00 : f32
    %78 = vector.broadcast %cst_27 : f32 to vector<128x64xf32>
    %79 = arith.maximumf %77, %78 : vector<128x64xf32>
    %80 = arith.maximumf %61, %67 : vector<128x64xf32>
    %81 = arith.maximumf %73, %79 : vector<128x64xf32>
    %82 = arith.maximumf %80, %81 : vector<128x64xf32>
    %c0_28 = arith.constant 0 : index
    %c0_29 = arith.constant 0 : index
    %83 = vector.load %arg5[%c0_28, %c0_29] : memref<128x64xf32, #tpu.memory_space<vmem>>, vector<128x64xf32>
    tpu.vector_store %arg5[%c0_28, %c0_29], %82 {strides = array<i32>} : memref<128x64xf32, #tpu.memory_space<vmem>>, vector<128x64xf32>,
    return
  }
}

</mosaic_0001>

<bundles_post_ra>
// kernel: tpu_custom_call.1
= control target key start
LH: loop header
LB: loop body
LE: loop exit
PB: predicated region body
PF: predicated region fallthrough
CT: control target
= control target key end

     0   :  { %10 = vsyncpa [#allocation3], 0  ;;  %s1666_s18 = smov [#allocation2]   ;;  %s2909_s0 = inlined_call_operand.hbm [shape: f32[4,128,128], index: 0, kind: input, shape index: {}]   ;;  %s2910_s1 = inlined_call_operand.vmem [shape: f32[128,64], index: 1, kind: input, shape index: {}]   ;;  %s2911_s2 = inlined_call_operand.vmem [shape: f32[1,64], index: 2, kind: input, shape index: {}]   ;;  %s2912_s3 = inlined_call_operand.vmem [shape: f32[1,64], index: 3, kind: input, shape index: {}]   ;;  %s2913_s4 = inlined_call_operand.vmem [shape: f32[1,64], index: 4, kind: input, shape index: {}]   ;;  %s2914_s5 = inlined_call_operand.vmem [shape: f32[128,64], index: 5, kind: output, shape index: {}]  }
   0x1   :  { %s16_s19 = sshll.u32 %s1666_s18, 4  ;;  %s17_s19 = int_to_ptr.vmem [resolvable:$true] %s16_s19 }
   0x2   :  { %s1652_s20 = scalar_lea.vmem %s17_s19, 8192  ;;  %p1657_p1 = scmp.lt.s32.totalorder %s17_s19, %s17_s19 }
   0x3   :  { %p1653_p0 = scmp.ne.s32.totalorder %s17_s19, %s1652_s20  ;;  %p1658_p2 = scmp.lt.s32.totalorder %s1652_s20, %s1652_s20 }
   0x5   :  { %p1659_p3 = por %p1658_p2, %p1657_p1 }
   0x7   :  { %p1660_p4 = pnand %p1659_p3, %p1653_p0 }
   0x9   :  { %1663 = shalt.err (!%p1660_p4)
}
   0xa   :  { %s1667_s21 = smov 128   ;;  %s1668_s22 = smov 8  }
   0xb   :  { %22 = dma.hbm_to_vmem [thread:$0]  %s2909_s0, 8192, %s17_s19, [#allocation3], %s1667_s21, %s1667_s21, %s1668_s22  }
   0xc   :  { %1664 = dma.done.wait [#allocation3], 8192  }
   0xd   :  { %1665 = vsyncadd [#allocation3], 4294959104  ;;  %v1705_v0 = vld [vmem:[%s2910_s1 + $0x78] sm:$0xff]  ;;  %v1710_v1 = vld [vmem:[%s2910_s1 + $0x70] sm:$0xff]  ;;  %vm752_vm0 = vcmask 523264  }
   0xe   :  { %1415 = vmatprep.subr.mxu0 %v1705_v0  ;;  %1471 = vmatprep.subr.mxu1 %v1705_v0  ;;  %v1719_v2 = vld [vmem:[%s2910_s1 + $0x68] sm:$0xff]  ;;  %v1728_v3 = vld [vmem:[%s2910_s1 + $0x60] sm:$0xff]  ;;  %v1737_v4 = vld [vmem:[%s2910_s1 + $0x58] sm:$0xff] }
   0xf   :  { %1416 = vmatpush3.msra.mxu0 %v1705_v0  ;;  %1472 = vmatpush3.msra.mxu1 %v1705_v0  ;;  %v1746_v5 = vld [vmem:[%s2910_s1 + $0x50] sm:$0xff]  ;;  %v1755_v6 = vld [vmem:[%s2910_s1 + $0x48] sm:$0xff]  ;;  %v1764_v7 = vld [vmem:[%s2910_s1 + $0x40] sm:$0xff] }
  0x10   :  { %1417 = vmatprep.subr.mxu0 %v1710_v1  ;;  %1473 = vmatprep.subr.mxu1 %v1710_v1  ;;  %v1773_v8 = vld [vmem:[%s2910_s1 + $0x38] sm:$0xff]  ;;  %v1782_v9 = vld [vmem:[%s2910_s1 + $0x30] sm:$0xff]  ;;  %v1791_v10 = vld [vmem:[%s2910_s1 + $0x28] sm:$0xff] }
  0x11   :  { %1418 = vmatpush3.msra.mxu0 %v1710_v1  ;;  %1474 = vmatpush3.msra.mxu1 %v1710_v1  ;;  %v1800_v11 = vld [vmem:[%s2910_s1 + $0x20] sm:$0xff]  ;;  %v1809_v12 = vld [vmem:[%s2910_s1 + $0x18] sm:$0xff]  ;;  %v1818_v13 = vld [vmem:[%s2910_s1 + $0x10] sm:$0xff] }
  0x12   :  { %1419 = vmatprep.subr.mxu0 %v1719_v2  ;;  %1475 = vmatprep.subr.mxu1 %v1719_v2  ;;  %v1827_v14 = vld [vmem:[%s2910_s1 + $0x8] sm:$0xff]  ;;  %v1836_v15 = vld [vmem:[%s2910_s1] sm:$0xff]  ;;  %v53_v20 = vld [vmem:[#allocation2 + $0x10] sm:$0xff] }
  0x13   :  { %1420 = vmatpush3.msra.mxu0 %v1719_v2  ;;  %1476 = vmatpush3.msra.mxu1 %v1719_v2  ;;  %v51_v16 = vld [vmem:[#allocation2] sm:$0xff]  ;;  %v52_v18 = vld [vmem:[#allocation2 + $0x8] sm:$0xff]  ;;  %v221_v21 = vld [vmem:[#allocation2 + $0x90] sm:$0xff] }
  0x14   :  { %1421 = vmatprep.subr.mxu0 %v1728_v3  ;;  %1477 = vmatprep.subr.mxu1 %v1728_v3  ;;  %v219_v17 = vld [vmem:[#allocation2 + $0x80] sm:$0xff]  ;;  %v220_v19 = vld [vmem:[#allocation2 + $0x88] sm:$0xff]  ;;  %v54_v22 = vld [vmem:[#allocation2 + $0x18] sm:$0xff] }
  0x15   :  { %1422 = vmatpush3.msra.mxu0 %v1728_v3  ;;  %1478 = vmatpush3.msra.mxu1 %v1728_v3  ;;  %v222_v23 = vld [vmem:[#allocation2 + $0x98] sm:$0xff]  ;;  %v55_v24 = vld [vmem:[#allocation2 + $0x20] sm:$0xff]  ;;  %v56_v26 = vld [vmem:[#allocation2 + $0x28] sm:$0xff] }
  0x16   :  { %1423 = vmatprep.subr.mxu0 %v1737_v4  ;;  %1479 = vmatprep.subr.mxu1 %v1737_v4  ;;  %v223_v25 = vld [vmem:[#allocation2 + $0xa0] sm:$0xff]  ;;  %v224_v27 = vld [vmem:[#allocation2 + $0xa8] sm:$0xff]  ;;  %v57_v28 = vld [vmem:[#allocation2 + $0x30] sm:$0xff] }
  0x17   :  { %1424 = vmatpush3.msra.mxu0 %v1737_v4  ;;  %1480 = vmatpush3.msra.mxu1 %v1737_v4  ;;  %v225_v29 = vld [vmem:[#allocation2 + $0xb0] sm:$0xff]  ;;  %v58_v30 = vld [vmem:[#allocation2 + $0x38] sm:$0xff]  ;;  %v59_v32 = vld [vmem:[#allocation2 + $0x40] sm:$0xff] }
  0x18   :  { %1425 = vmatprep.subr.mxu0 %v1746_v5  ;;  %1481 = vmatprep.subr.mxu1 %v1746_v5  ;;  %v226_v31 = vld [vmem:[#allocation2 + $0xb8] sm:$0xff]  ;;  %v227_v33 = vld [vmem:[#allocation2 + $0xc0] sm:$0xff]  ;;  %v60_v34 = vld [vmem:[#allocation2 + $0x48] sm:$0xff] }
  0x19   :  { %1426 = vmatpush3.msra.mxu0 %v1746_v5  ;;  %1482 = vmatpush3.msra.mxu1 %v1746_v5  ;;  %v228_v35 = vld [vmem:[#allocation2 + $0xc8] sm:$0xff]  ;;  %v61_v36 = vld [vmem:[#allocation2 + $0x50] sm:$0xff]  ;;  %v62_v38 = vld [vmem:[#allocation2 + $0x58] sm:$0xff] }
  0x1a   :  { %1427 = vmatprep.subr.mxu0 %v1755_v6  ;;  %1483 = vmatprep.subr.mxu1 %v1755_v6  ;;  %v229_v37 = vld [vmem:[#allocation2 + $0xd0] sm:$0xff]  ;;  %v230_v39 = vld [vmem:[#allocation2 + $0xd8] sm:$0xff]  ;;  %v63_v40 = vld [vmem:[#allocation2 + $0x60] sm:$0xff] }
  0x1b   :  { %1428 = vmatpush3.msra.mxu0 %v1755_v6  ;;  %1484 = vmatpush3.msra.mxu1 %v1755_v6  ;;  %v231_v41 = vld [vmem:[#allocation2 + $0xe0] sm:$0xff]  ;;  %v64_v42 = vld [vmem:[#allocation2 + $0x68] sm:$0xff]  ;;  %v65_v44 = vld [vmem:[#allocation2 + $0x70] sm:$0xff] }
  0x1c   :  { %1429 = vmatprep.subr.mxu0 %v1764_v7  ;;  %1485 = vmatprep.subr.mxu1 %v1764_v7  ;;  %v232_v43 = vld [vmem:[#allocation2 + $0xe8] sm:$0xff]  ;;  %v233_v45 = vld [vmem:[#allocation2 + $0xf0] sm:$0xff]  ;;  %v66_v46 = vld [vmem:[#allocation2 + $0x78] sm:$0xff] }
  0x1d   :  { %1430 = vmatpush3.msra.mxu0 %v1764_v7  ;;  %1486 = vmatpush3.msra.mxu1 %v1764_v7  ;;  %v234_v47 = vld [vmem:[#allocation2 + $0xf8] sm:$0xff]  ;;  %v381_v48 = vld [vmem:[#allocation2 + $0x100] sm:$0xff]  ;;  %v382_v49 = vld [vmem:[#allocation2 + $0x108] sm:$0xff] }
  0x1e   :  { %1431 = vmatprep.subr.mxu0 %v1773_v8  ;;  %1487 = vmatprep.subr.mxu1 %v1773_v8  ;;  %v543_v50 = vld [vmem:[#allocation2 + $0x180] sm:$0xff]  ;;  %v383_v51 = vld [vmem:[#allocation2 + $0x110] sm:$0xff]  ;;  %v544_v52 = vld [vmem:[#allocation2 + $0x188] sm:$0xff] }
  0x1f   :  { %1432 = vmatpush3.msra.mxu0 %v1773_v8  ;;  %1488 = vmatpush3.msra.mxu1 %v1773_v8  ;;  %v545_v53 = vld [vmem:[#allocation2 + $0x190] sm:$0xff]  ;;  %v384_v54 = vld [vmem:[#allocation2 + $0x118] sm:$0xff]  ;;  %v385_v55 = vld [vmem:[#allocation2 + $0x120] sm:$0xff] }
  0x20   :  { %1433 = vmatprep.subr.mxu0 %v1782_v9  ;;  %1489 = vmatprep.subr.mxu1 %v1782_v9  ;;  %v546_v56 = vld [vmem:[#allocation2 + $0x198] sm:$0xff]  ;;  %v547_v57 = vld [vmem:[#allocation2 + $0x1a0] sm:$0xff]  ;;  %v386_v58 = vld [vmem:[#allocation2 + $0x128] sm:$0xff] }
  0x21   :  { %1434 = vmatpush3.msra.mxu0 %v1782_v9  ;;  %1490 = vmatpush3.msra.mxu1 %v1782_v9  ;;  %v387_v59 = vld [vmem:[#allocation2 + $0x130] sm:$0xff]  ;;  %v548_v60 = vld [vmem:[#allocation2 + $0x1a8] sm:$0xff]  ;;  %v388_v62 = vld [vmem:[#allocation2 + $0x138] sm:$0xff] }
  0x22   :  { %1435 = vmatprep.subr.mxu0 %v1791_v10  ;;  %1491 = vmatprep.subr.mxu1 %v1791_v10  ;;  %v549_v61 = vld [vmem:[#allocation2 + $0x1b0] sm:$0xff]  ;;  %v389_v63 = vld [vmem:[#allocation2 + $0x140] sm:$0xff] }
  0x23   :  { %1436 = vmatpush3.msra.mxu0 %v1791_v10  ;;  %1492 = vmatpush3.msra.mxu1 %v1791_v10 }
  0x24   :  { %1437 = vmatprep.subr.mxu0 %v1800_v11  ;;  %1493 = vmatprep.subr.mxu1 %v1800_v11 }
  0x25   :  { %1438 = vmatpush3.msra.mxu0 %v1800_v11  ;;  %1494 = vmatpush3.msra.mxu1 %v1800_v11 }
  0x26   :  { %1439 = vmatprep.subr.mxu0 %v1809_v12  ;;  %1495 = vmatprep.subr.mxu1 %v1809_v12 }
  0x27   :  { %1440 = vmatpush3.msra.mxu0 %v1809_v12  ;;  %1496 = vmatpush3.msra.mxu1 %v1809_v12 }
  0x28   :  { %1441 = vmatprep.subr.mxu0 %v1818_v13  ;;  %1497 = vmatprep.subr.mxu1 %v1818_v13 }
  0x29   :  { %1442 = vmatpush3.msra.mxu0 %v1818_v13  ;;  %1498 = vmatpush3.msra.mxu1 %v1818_v13 }
  0x2a   :  { %1443 = vmatprep.subr.mxu0 %v1827_v14  ;;  %1499 = vmatprep.subr.mxu1 %v1827_v14 }
  0x2b   :  { %1444 = vmatpush3.msra.mxu0 %v1827_v14  ;;  %1500 = vmatpush3.msra.mxu1 %v1827_v14 }
  0x2c   :  { %1445 = vmatprep.subr.mxu0 %v1836_v15  ;;  %1501 = vmatprep.subr.mxu1 %v1836_v15 }
  0x2d   :  { %1446 = vmatpush3.msra.mxu0 %v1836_v15  ;;  %1447 = vmatprep.mubr.f32.mxu0 %v51_v16 }
  0x2e   :  { %1502 = vmatpush3.msra.mxu1 %v1836_v15  ;;  %1503 = vmatprep.mubr.f32.mxu1 %v219_v17 }
  0x2f   :  { %1448 = vmatmul.mubr.f32.vlgmr.msra.gmra.mxu0 %v52_v18  ;;  %1504 = vmatmul.mubr.f32.vlgmr.msra.gmra.mxu1 %v220_v19 }
  0x30   :  { %1527 = vmatprep.subr.mxu0 %v1705_v0  ;;  %1583 = vmatprep.subr.mxu1 %v1705_v0 }
  0x31   :  { %1528 = vmatpush3.msra.mxu0 %v1705_v0  ;;  %1584 = vmatpush3.msra.mxu1 %v1705_v0  ;;  %v550_v0 = vld [vmem:[#allocation2 + $0x1b8] sm:$0xff] }
  0x32   :  { %1529 = vmatprep.subr.mxu0 %v1710_v1  ;;  %1450 = vmatprep.mubr.f32.mxu0 %v53_v20 }
  0x33   :  { %1506 = vmatprep.mubr.f32.mxu1 %v221_v21  ;;  %1530 = vmatpush3.msra.mxu0 %v1710_v1 }
  0x34   :  { %1585 = vmatprep.subr.mxu1 %v1710_v1  ;;  %1451 = vmatmul.mubr.f32.gmra.mxu0 %v54_v22 }
  0x35   :  { %1507 = vmatmul.mubr.f32.gmra.mxu1 %v222_v23  ;;  %1531 = vmatprep.subr.mxu0 %v1719_v2 }
  0x36   :  { %1586 = vmatpush3.msra.mxu1 %v1710_v1  ;;  %1532 = vmatpush3.msra.mxu0 %v1719_v2  ;;  %v551_v1 = vld [vmem:[#allocation2 + $0x1c0] sm:$0xff] }
  0x37   :  { %1587 = vmatprep.subr.mxu1 %v1719_v2  ;;  %1533 = vmatprep.subr.mxu0 %v1728_v3 }
  0x38   :  { %1588 = vmatpush3.msra.mxu1 %v1719_v2  ;;  %1453 = vmatprep.mubr.f32.mxu0 %v55_v24  ;;  %v390_v2 = vld [vmem:[#allocation2 + $0x148] sm:$0xff] }
  0x39   :  { %1509 = vmatprep.mubr.f32.mxu1 %v223_v25  ;;  %1534 = vmatpush3.msra.mxu0 %v1728_v3 }
  0x3a   :  { %1589 = vmatprep.subr.mxu1 %v1728_v3  ;;  %1454 = vmatmul.mubr.f32.gmra.mxu0 %v56_v26 }
  0x3b   :  { %1510 = vmatmul.mubr.f32.gmra.mxu1 %v224_v27  ;;  %1535 = vmatprep.subr.mxu0 %v1737_v4 }
  0x3c   :  { %1590 = vmatpush3.msra.mxu1 %v1728_v3  ;;  %1536 = vmatpush3.msra.mxu0 %v1737_v4  ;;  %v391_v3 = vld [vmem:[#allocation2 + $0x150] sm:$0xff] }
  0x3d   :  { %1591 = vmatprep.subr.mxu1 %v1737_v4  ;;  %1537 = vmatprep.subr.mxu0 %v1746_v5 }
  0x3e   :  { %1592 = vmatpush3.msra.mxu1 %v1737_v4  ;;  %1456 = vmatprep.mubr.f32.mxu0 %v57_v28  ;;  %v552_v4 = vld [vmem:[#allocation2 + $0x1c8] sm:$0xff] }
  0x3f   :  { %1512 = vmatprep.mubr.f32.mxu1 %v225_v29  ;;  %1538 = vmatpush3.msra.mxu0 %v1746_v5 }
  0x40   :  { %1593 = vmatprep.subr.mxu1 %v1746_v5  ;;  %1457 = vmatmul.mubr.f32.gmra.mxu0 %v58_v30 }
  0x41   :  { %1513 = vmatmul.mubr.f32.gmra.mxu1 %v226_v31  ;;  %1539 = vmatprep.subr.mxu0 %v1755_v6 }
  0x42   :  { %1594 = vmatpush3.msra.mxu1 %v1746_v5  ;;  %1540 = vmatpush3.msra.mxu0 %v1755_v6  ;;  %v553_v5 = vld [vmem:[#allocation2 + $0x1d0] sm:$0xff] }
  0x43   :  { %1595 = vmatprep.subr.mxu1 %v1755_v6  ;;  %1541 = vmatprep.subr.mxu0 %v1764_v7 }
  0x44   :  { %1596 = vmatpush3.msra.mxu1 %v1755_v6  ;;  %1459 = vmatprep.mubr.f32.mxu0 %v59_v32  ;;  %v392_v6 = vld [vmem:[#allocation2 + $0x158] sm:$0xff] }
  0x45   :  { %1515 = vmatprep.mubr.f32.mxu1 %v227_v33  ;;  %1542 = vmatpush3.msra.mxu0 %v1764_v7 }
  0x46   :  { %1597 = vmatprep.subr.mxu1 %v1764_v7  ;;  %1460 = vmatmul.mubr.f32.gmra.mxu0 %v60_v34 }
  0x47   :  { %1516 = vmatmul.mubr.f32.gmra.mxu1 %v228_v35  ;;  %1543 = vmatprep.subr.mxu0 %v1773_v8 }
  0x48   :  { %1598 = vmatpush3.msra.mxu1 %v1764_v7  ;;  %1544 = vmatpush3.msra.mxu0 %v1773_v8  ;;  %v393_v7 = vld [vmem:[#allocation2 + $0x160] sm:$0xff] }
  0x49   :  { %1599 = vmatprep.subr.mxu1 %v1773_v8  ;;  %1545 = vmatprep.subr.mxu0 %v1782_v9 }
  0x4a   :  { %1600 = vmatpush3.msra.mxu1 %v1773_v8  ;;  %1462 = vmatprep.mubr.f32.mxu0 %v61_v36  ;;  %v554_v8 = vld [vmem:[#allocation2 + $0x1d8] sm:$0xff] }
  0x4b   :  { %1518 = vmatprep.mubr.f32.mxu1 %v229_v37  ;;  %1546 = vmatpush3.msra.mxu0 %v1782_v9 }
  0x4c   :  { %1601 = vmatprep.subr.mxu1 %v1782_v9  ;;  %1463 = vmatmul.mubr.f32.gmra.mxu0 %v62_v38 }
  0x4d   :  { %1519 = vmatmul.mubr.f32.gmra.mxu1 %v230_v39  ;;  %1547 = vmatprep.subr.mxu0 %v1791_v10 }
  0x4e   :  { %1602 = vmatpush3.msra.mxu1 %v1782_v9  ;;  %1548 = vmatpush3.msra.mxu0 %v1791_v10  ;;  %v555_v9 = vld [vmem:[#allocation2 + $0x1e0] sm:$0xff] }
  0x4f   :  { %1603 = vmatprep.subr.mxu1 %v1791_v10  ;;  %1549 = vmatprep.subr.mxu0 %v1800_v11 }
  0x50   :  { %1604 = vmatpush3.msra.mxu1 %v1791_v10  ;;  %1465 = vmatprep.mubr.f32.mxu0 %v63_v40  ;;  %v394_v10 = vld [vmem:[#allocation2 + $0x168] sm:$0xff] }
  0x51   :  { %1521 = vmatprep.mubr.f32.mxu1 %v231_v41  ;;  %1550 = vmatpush3.msra.mxu0 %v1800_v11 }
  0x52   :  { %1605 = vmatprep.subr.mxu1 %v1800_v11  ;;  %1466 = vmatmul.mubr.f32.gmra.mxu0 %v64_v42 }
  0x53   :  { %1522 = vmatmul.mubr.f32.gmra.mxu1 %v232_v43  ;;  %1551 = vmatprep.subr.mxu0 %v1809_v12 }
  0x54   :  { %1606 = vmatpush3.msra.mxu1 %v1800_v11  ;;  %1552 = vmatpush3.msra.mxu0 %v1809_v12  ;;  %v395_v11 = vld [vmem:[#allocation2 + $0x170] sm:$0xff] }
  0x55   :  { %1607 = vmatprep.subr.mxu1 %v1809_v12  ;;  %1553 = vmatprep.subr.mxu0 %v1818_v13 }
  0x56   :  { %1608 = vmatpush3.msra.mxu1 %v1809_v12  ;;  %1468 = vmatprep.mubr.f32.mxu0 %v65_v44  ;;  %v556_v12 = vld [vmem:[#allocation2 + $0x1e8] sm:$0xff]  ;;  %v1929_v44 = vld [vmem:[%s2911_s2] ss:$0 sm:$0xff] }
  0x57   :  { %1524 = vmatprep.mubr.f32.mxu1 %v233_v45  ;;  %1554 = vmatpush3.msra.mxu0 %v1818_v13 }
  0x58   :  { %1609 = vmatprep.subr.mxu1 %v1818_v13  ;;  %1469 = vmatmul.mubr.f32.gmra.mxu0 %v66_v46 }
  0x59   :  { %1525 = vmatmul.mubr.f32.gmra.mxu1 %v234_v47  ;;  %1555 = vmatprep.subr.mxu0 %v1827_v14 }
  0x5a   :  { %1610 = vmatpush3.msra.mxu1 %v1818_v13  ;;  %1556 = vmatpush3.msra.mxu0 %v1827_v14  ;;  %v557_v13 = vld [vmem:[#allocation2 + $0x1f0] sm:$0xff] }
  0x5b   :  { %1611 = vmatprep.subr.mxu1 %v1827_v14  ;;  %1557 = vmatprep.subr.mxu0 %v1836_v15 }
  0x5c   :  { %1612 = vmatpush3.msra.mxu1 %v1827_v14  ;;  %1558 = vmatpush3.msra.mxu0 %v1836_v15  ;;  %v396_v14 = vld [vmem:[#allocation2 + $0x178] sm:$0xff] }
  0x5d   :  { %1559 = vmatprep.mubr.f32.mxu0 %v381_v48  ;;  %1613 = vmatprep.subr.mxu1 %v1836_v15 }
  0x5e   :  { %1560 = vmatmul.mubr.f32.vlgmr.msra.gmra.mxu0 %v382_v49  ;;  %1614 = vmatpush3.msra.mxu1 %v1836_v15  ;;  %v558_v15 = vld [vmem:[#allocation2 + $0x1f8] sm:$0xff] }
  0x5f   :  { %1615 = vmatprep.mubr.f32.mxu1 %v543_v50  ;;  %1562 = vmatprep.mubr.f32.mxu0 %v383_v51 }
  0x60   :  { %1616 = vmatmul.mubr.f32.vlgmr.msra.gmra.mxu1 %v544_v52 }
  0x61   :  { %1618 = vmatprep.mubr.f32.mxu1 %v545_v53 }
  0x62   :  { %1563 = vmatmul.mubr.f32.gmra.mxu0 %v384_v54 }
  0x63   :  { %1565 = vmatprep.mubr.f32.mxu0 %v385_v55 }
  0x64   :  { %1619 = vmatmul.mubr.f32.gmra.mxu1 %v546_v56 }
  0x65   :  { %1621 = vmatprep.mubr.f32.mxu1 %v547_v57 }
  0x66   :  { %1566 = vmatmul.mubr.f32.gmra.mxu0 %v386_v58 }
  0x67   :  { %1568 = vmatprep.mubr.f32.mxu0 %v387_v59 }
  0x68   :  { %1622 = vmatmul.mubr.f32.gmra.mxu1 %v548_v60 }
  0x69   :  { %1624 = vmatprep.mubr.f32.mxu1 %v549_v61 }
  0x6a   :  { %1569 = vmatmul.mubr.f32.gmra.mxu0 %v388_v62 }
  0x6b   :  { %1571 = vmatprep.mubr.f32.mxu0 %v389_v63 }
  0x6c   :  { %1625 = vmatmul.mubr.f32.gmra.mxu1 %v550_v0 }
  0x6d   :  { %1627 = vmatprep.mubr.f32.mxu1 %v551_v1 }
  0x6e   :  { %1572 = vmatmul.mubr.f32.gmra.mxu0 %v390_v2 }
  0x6f   :  { %1574 = vmatprep.mubr.f32.mxu0 %v391_v3 }
  0x70   :  { %1628 = vmatmul.mubr.f32.gmra.mxu1 %v552_v4 }
  0x71   :  { %1630 = vmatprep.mubr.f32.mxu1 %v553_v5 }
  0x72   :  { %1575 = vmatmul.mubr.f32.gmra.mxu0 %v392_v6 }
  0x73   :  { %1577 = vmatprep.mubr.f32.mxu0 %v393_v7 }
  0x74   :  { %1631 = vmatmul.mubr.f32.gmra.mxu1 %v554_v8 }
  0x75   :  { %1633 = vmatprep.mubr.f32.mxu1 %v555_v9 }
  0x76   :  { %1578 = vmatmul.mubr.f32.gmra.mxu0 %v394_v10 }
  0x77   :  { %1580 = vmatprep.mubr.f32.mxu0 %v395_v11 }
  0x78   :  { %1634 = vmatmul.mubr.f32.gmra.mxu1 %v556_v12 }
  0x79   :  { %1636 = vmatprep.mubr.f32.mxu1 %v557_v13 }
  0x7a   :  { %1581 = vmatmul.mubr.f32.gmra.mxu0 %v396_v14 }
  0x7c   :  { %1637 = vmatmul.mubr.f32.gmra.mxu1 %v558_v15 }
  0xef   :  { %v1449_v16 = vpop.f32.mrf.mxu0  ;;  %v1505_v17 = vpop.f32.mrf.mxu1 }
  0xf0   :  { %v1938_v48 = vadd.f32 %v1449_v16, %v1929_v44  ;;  %v1941_v49 = vadd.f32 %v1505_v17, %v1929_v44 }
  0xf1   :  { %v139_v18 = vpop.f32.mrf.mxu0  ;;  %v301_v19 = vpop.f32.mrf.mxu1 }
  0xf2   :  { %3003 = vst [vmem:[#allocation5_spill] sm:$0xff] %v1941_v49  ;;  %v1944_v50 = vadd.f32 %v1929_v44, %v139_v18  ;;  %v1947_v51 = vadd.f32 %v1929_v44, %v301_v19  ;;  %v705_v56 = vadd.f32 %v1941_v49, %v1938_v48 }
  0xf4   :  { %v1452_v20 = vpop.f32.mrf.mxu0  ;;  %3004 = vst [vmem:[#allocation6_spill] sm:$0xff] %v1947_v51  ;;  %v704_v58 = vadd.f32 %v1947_v51, %v1944_v50 }
  0xf5   :  { %v1508_v21 = vpop.f32.mrf.mxu1  ;;  %v1950_v52 = vadd.f32 %v1452_v20, %v1929_v44 }
  0xf6   :  { %v149_v22 = vpop.f32.mrf.mxu0  ;;  %v1953_v53 = vadd.f32 %v1508_v21, %v1929_v44 }
  0xf7   :  { %v311_v23 = vpop.f32.mrf.mxu1  ;;  %3005 = vst [vmem:[#allocation7_spill] sm:$0xff] %v1950_v52  ;;  %v1967_v60 = vadd.f32 %v1929_v44, %v149_v22 }
  0xf8   :  { %3006 = vst [vmem:[#allocation8_spill] sm:$0xff] %v1953_v53  ;;  %v707_v59 = vadd.f32 %v1953_v53, %v1950_v52  ;;  %v1970_v61 = vadd.f32 %v1929_v44, %v311_v23 }
  0xf9   :  { %3007 = vst [vmem:[#allocation9_spill] sm:$0xff] %v1967_v60 }
  0xfa   :  { %v1455_v24 = vpop.f32.mrf.mxu0  ;;  %3008 = vst [vmem:[#allocation10_spill] sm:$0xff] %v1970_v61  ;;  %v706_v14 = vadd.f32 %v1970_v61, %v1967_v60 }
  0xfb   :  { %v1511_v25 = vpop.f32.mrf.mxu1  ;;  %v1973_v0 = vadd.f32 %v1455_v24, %v1929_v44 }
  0xfc   :  { %v159_v26 = vpop.f32.mrf.mxu0  ;;  %v1976_v1 = vadd.f32 %v1511_v25, %v1929_v44 }
  0xfd   :  { %v321_v27 = vpop.f32.mrf.mxu1  ;;  %3009 = vst [vmem:[#allocation11_spill] sm:$0xff] %v1973_v0  ;;  %v1979_v2 = vadd.f32 %v1929_v44, %v159_v26 }
  0xfe   :  { %3010 = vst [vmem:[#allocation12_spill] sm:$0xff] %v1976_v1  ;;  %v1985_v4 = vadd.f32 %v1929_v44, %v321_v27 }
  0xff   :  { %3011 = vst [vmem:[#allocation13_spill] sm:$0xff] %v1979_v2 }
 0x100   :  { %v1458_v28 = vpop.f32.mrf.mxu0  ;;  %3012 = vst [vmem:[#allocation14_spill] sm:$0xff] %v1985_v4 }
 0x101   :  { %v1514_v29 = vpop.f32.mrf.mxu1  ;;  %v1988_v5 = vadd.f32 %v1458_v28, %v1929_v44 }
 0x102   :  { %v169_v30 = vpop.f32.mrf.mxu0  ;;  %v1995_v10 = vadd.f32 %v1514_v29, %v1929_v44 }
 0x103   :  { %v331_v31 = vpop.f32.mrf.mxu1  ;;  %3013 = vst [vmem:[#allocation15_spill] sm:$0xff] %v1988_v5  ;;  %v2007_v15 = vadd.f32 %v1929_v44, %v169_v30  ;;  %v709_v30 = vadd.f32 %v1976_v1, %v1973_v0 }
 0x104   :  { %3014 = vst [vmem:[#allocation16_spill] sm:$0xff] %v1995_v10  ;;  %v2010_v16 = vadd.f32 %v1929_v44, %v331_v31  ;;  %v708_v31 = vadd.f32 %v1985_v4, %v1979_v2 }
 0x105   :  { %3015 = vst [vmem:[#allocation17_spill] sm:$0xff] %v2007_v15 }
 0x106   :  { %v1461_v32 = vpop.f32.mrf.mxu0  ;;  %3016 = vst [vmem:[#allocation18_spill] sm:$0xff] %v2010_v16 }
 0x107   :  { %v1517_v33 = vpop.f32.mrf.mxu1  ;;  %v2013_v17 = vadd.f32 %v1461_v32, %v1929_v44  ;;  %v711_v32 = vadd.f32 %v1995_v10, %v1988_v5 }
 0x108   :  { %v179_v34 = vpop.f32.mrf.mxu0  ;;  %v2016_v20 = vadd.f32 %v1517_v33, %v1929_v44 }
 0x109   :  { %v341_v35 = vpop.f32.mrf.mxu1  ;;  %3017 = vst [vmem:[#allocation19_spill] sm:$0xff] %v2013_v17  ;;  %v2019_v21 = vadd.f32 %v1929_v44, %v179_v34  ;;  %v710_v34 = vadd.f32 %v2010_v16, %v2007_v15 }
 0x10a   :  { %3018 = vst [vmem:[#allocation20_spill] sm:$0xff] %v2016_v20  ;;  %v2022_v22 = vadd.f32 %v1929_v44, %v341_v35 }
 0x10b   :  { %3019 = vst [vmem:[#allocation21_spill] sm:$0xff] %v2019_v21 }
 0x10c   :  { %v1910_v36 = vpop.f32.mrf.mxu0  ;;  %3020 = vst [vmem:[#allocation22_spill] sm:$0xff] %v2022_v22 }
 0x10d   :  { %v1912_v37 = vpop.f32.mrf.mxu1 }
 0x10e   :  { %v1914_v38 = vpop.f32.mrf.mxu0 }
 0x10f   :  { %v1916_v39 = vpop.f32.mrf.mxu1 }
 0x112   :  { %v1918_v40 = vpop.f32.mrf.mxu0 }
 0x113   :  { %v1920_v41 = vpop.f32.mrf.mxu1 }
 0x114   :  { %v1922_v42 = vpop.f32.mrf.mxu0 }
 0x115   :  { %v1924_v43 = vpop.f32.mrf.mxu1 }
 0x118   :  { %v1931_v45 = vpop.f32.mrf.mxu0 }
 0x119   :  { %v1933_v46 = vpop.f32.mrf.mxu1 }
 0x11a   :  { %v1935_v47 = vpop.f32.mrf.mxu0 }
 0x11b   :  { %v1955_v54 = vpop.f32.mrf.mxu1 }
 0x11e   :  { %v1561_v55 = vpop.f32.mrf.mxu0 }
 0x11f   :  { %v1960_v57 = vadd.f32 %v1561_v55, %v1929_v44 }
 0x120   :  { %v1617_v62 = vpop.f32.mrf.mxu1  ;;  %v463_v63 = vpop.f32.mrf.mxu0 }
 0x121   :  { %v1982_v3 = vadd.f32 %v1929_v44, %v463_v63  ;;  %v721_v6 = vadd.f32 %v705_v56, %v1960_v57  ;;  %v1992_v7 = vadd.f32 %v1617_v62, %v1929_v44  ;;  %v713_v62 = vadd.f32 %v2016_v20, %v2013_v17 }
 0x122   :  { %v625_v8 = vpop.f32.mrf.mxu1  ;;  %v1564_v9 = vpop.f32.mrf.mxu0 }
 0x123   :  { %v720_v11 = vadd.f32 %v704_v58, %v1982_v3  ;;  %v1999_v12 = vadd.f32 %v1929_v44, %v625_v8  ;;  %v2002_v13 = vadd.f32 %v1564_v9, %v1929_v44  ;;  %v737_v24 = vadd.f32 %v721_v6, %v1992_v7 }
 0x124   :  { %v1620_v18 = vpop.f32.mrf.mxu1  ;;  %v473_v19 = vpop.f32.mrf.mxu0  ;;  %v712_v9 = vadd.f32 %v2022_v22, %v2019_v21 }
 0x125   :  { %v736_v23 = vadd.f32 %v720_v11, %v1999_v12  ;;  %v723_v25 = vadd.f32 %v707_v59, %v2002_v13  ;;  %v2028_v26 = vadd.f32 %v1620_v18, %v1929_v44  ;;  %v2031_v27 = vadd.f32 %v1929_v44, %v473_v19 }
 0x126   :  { %v635_v28 = vpop.f32.mrf.mxu1  ;;  %v1567_v29 = vpop.f32.mrf.mxu0  ;;  %v754_v11 = vsel %vm752_vm0, %v737_v24, 0.0  ;;  %v2076_v24 = vadd.f32 %v1912_v37, %v1929_v44 }
 0x127   :  { %3021 = vst [vmem:[#allocation23_spill] sm:$0xff] %v2028_v26  ;;  %v2040_v33 = vadd.f32 %v1567_v29, %v1929_v44  ;;  %v753_v35 = vsel %vm752_vm0, %v736_v23, 0.0  ;;  %v722_v55 = vadd.f32 %v706_v14, %v2031_v27  ;;  %v2047_v56 = vadd.f32 %v1929_v44, %v635_v28 }
 0x128   :  { %v1623_v58 = vpop.f32.mrf.mxu1  ;;  %v483_v59 = vpop.f32.mrf.mxu0  ;;  %v739_v14 = vadd.f32 %v723_v25, %v2028_v26  ;;  %v755_v28 = vadd.f32 %v754_v11, %v753_v35  ;;  %3028 = vst [vmem:[#allocation30_spill] sm:$0xff] %v2076_v24  ;;  %v2080_v25 = vadd.f32 %v1929_v44, %v1914_v38  ;;  %v2085_v11 = vadd.f32 %v1929_v44, %v1916_v39 }
 0x129   :  { %3022 = vst [vmem:[#allocation24_spill] sm:$0xff] %v2040_v33  ;;  %3023 = vst [vmem:[#allocation25_spill] sm:$0xff] %v2047_v56  ;;  %v725_v63 = vadd.f32 %v709_v30, %v2040_v33  ;;  %v2053_v6 = vadd.f32 %v1623_v58, %v1929_v44  ;;  %v2056_v8 = vadd.f32 %v1929_v44, %v483_v59 }
 0x12a   :  { %v738_v18 = vadd.f32 %v722_v55, %v2047_v56  ;;  %v645_v19 = vpop.f32.mrf.mxu1  ;;  %v1570_v23 = vpop.f32.mrf.mxu0  ;;  %v2072_v59 = vadd.f32 %v1910_v36, %v1929_v44  ;;  %3029 = vst [vmem:[#allocation31_spill] sm:$0xff] %v2080_v25  ;;  %3030 = vst [vmem:[#allocation32_spill] sm:$0xff] %v2085_v11  ;;  %v758_v37 = vsel %vm752_vm0, %v739_v14, 0.0  ;;  %v2099_v39 = vadd.f32 %v1918_v40, %v1929_v44 }
 0x12b   :  { %3024 = vst [vmem:[#allocation26_spill] sm:$0xff] %v2053_v6  ;;  %v724_v29 = vadd.f32 %v708_v31, %v2056_v8  ;;  %v2065_v30 = vadd.f32 %v1929_v44, %v645_v19  ;;  %v2068_v58 = vadd.f32 %v1570_v23, %v1929_v44  ;;  %v741_v36 = vadd.f32 %v725_v63, %v2053_v6 }
 0x12c   :  { %3027 = vst [vmem:[#allocation29_spill] sm:$0xff] %v2072_v59  ;;  %v756_v31 = vsel %vm752_vm0, %v738_v18, 0.0  ;;  %v1626_v35 = vpop.f32.mrf.mxu1  ;;  %v493_v55 = vpop.f32.mrf.mxu0  ;;  %3033 = vst [vmem:[#allocation35_spill] sm:$0xff] %v2099_v39  ;;  %v2111_v14 = vadd.f32 %v1929_v44, %v1922_v42 }
 0x12d   :  { %3025 = vst [vmem:[#allocation27_spill] sm:$0xff] %v2065_v30  ;;  %3026 = vst [vmem:[#allocation28_spill] sm:$0xff] %v2068_v58  ;;  %v757_v19 = vadd.f32 %v756_v31, %v755_v28  ;;  %v740_v23 = vadd.f32 %v724_v29, %v2065_v30  ;;  %v727_v26 = vadd.f32 %v711_v32, %v2068_v58 }
 0x12e   :  { %v2092_v38 = vadd.f32 %v1626_v35, %v1929_v44  ;;  %v2095_v18 = vadd.f32 %v1929_v44, %v493_v55  ;;  %v655_v33 = vpop.f32.mrf.mxu1  ;;  %v1573_v56 = vpop.f32.mrf.mxu0  ;;  %v2107_v32 = vadd.f32 %v1920_v41, %v1929_v44  ;;  %3036 = vst [vmem:[#allocation38_spill] sm:$0xff] %v2111_v14 }
 0x12f   :  { %v759_v28 = vadd.f32 %v758_v37, %v757_v19  ;;  %v760_v63 = vsel %vm752_vm0, %v740_v23, 0.0  ;;  %v2103_v29 = vadd.f32 %v1573_v56, %v1929_v44  ;;  %v2115_v35 = vadd.f32 %v1929_v44, %v655_v33 }
 0x130   :  { %3031 = vst [vmem:[#allocation33_spill] sm:$0xff] %v2092_v38  ;;  %3032 = vst [vmem:[#allocation34_spill] sm:$0xff] %v2095_v18  ;;  %v726_v31 = vadd.f32 %v710_v34, %v2095_v18  ;;  %v1629_v40 = vpop.f32.mrf.mxu1  ;;  %v503_v55 = vpop.f32.mrf.mxu0  ;;  %v2119_v19 = vadd.f32 %v1929_v44, %v1924_v43  ;;  %v762_v56 = vsel %vm752_vm0, %v741_v36, 0.0  ;;  %v743_v42 = vadd.f32 %v727_v26, %v2092_v38 }
 0x131   :  { %3034 = vst [vmem:[#allocation36_spill] sm:$0xff] %v2103_v29  ;;  %3035 = vst [vmem:[#allocation37_spill] sm:$0xff] %v2107_v32  ;;  %v761_v23 = vadd.f32 %v760_v63, %v759_v28  ;;  %v2123_v41 = vadd.f32 %v1929_v44, %v503_v55  ;;  %v729_v34 = vadd.f32 %v713_v62, %v2103_v29 }
 0x132   :  { %3037 = vst [vmem:[#allocation39_spill] sm:$0xff] %v2115_v35  ;;  %3038 = vst [vmem:[#allocation40_spill] sm:$0xff] %v2119_v19  ;;  %v742_v37 = vadd.f32 %v726_v31, %v2115_v35  ;;  %v2129_v33 = vadd.f32 %v1629_v40, %v1929_v44  ;;  %v665_v6 = vpop.f32.mrf.mxu1  ;;  %v1576_v58 = vpop.f32.mrf.mxu0  ;;  %v715_v43 = vadd.f32 %v2076_v24, %v2072_v59  ;;  %v766_v38 = vsel %vm752_vm0, %v743_v42, 0.0 }
 0x133   :  { %3039 = vst [vmem:[#allocation41_spill] sm:$0xff] %v2123_v41  ;;  %v763_v30 = vadd.f32 %v762_v56, %v761_v23  ;;  %v728_v36 = vadd.f32 %v712_v9, %v2123_v41  ;;  %v2135_v28 = vadd.f32 %v1929_v44, %v665_v6  ;;  %v714_v26 = vadd.f32 %v2085_v11, %v2080_v25 }
 0x134   :  { %3040 = vst [vmem:[#allocation42_spill] sm:$0xff] %v2129_v33  ;;  %v717_v62 = vadd.f32 %v2107_v32, %v2099_v39  ;;  %v764_v63 = vsel %vm752_vm0, %v742_v37, 0.0  ;;  %v2143_v31 = vadd.f32 %v1576_v58, %v1929_v44  ;;  %v1632_v40 = vpop.f32.mrf.mxu1  ;;  %v513_v55 = vpop.f32.mrf.mxu0  ;;  %v716_v56 = vadd.f32 %v2119_v19, %v2111_v14 }
 0x135   :  { %3041 = vst [vmem:[#allocation43_spill] sm:$0xff] %v2135_v28  ;;  %v765_v9 = vadd.f32 %v764_v63, %v763_v30  ;;  %v744_v6 = vadd.f32 %v728_v36, %v2135_v28  ;;  %v2149_v23 = vadd.f32 %v1632_v40, %v1929_v44  ;;  %v745_v29 = vadd.f32 %v729_v34, %v2129_v33 }
 0x136   :  { %3042 = vst [vmem:[#allocation44_spill] sm:$0xff] %v2143_v31  ;;  %v731_v37 = vadd.f32 %v715_v43, %v2143_v31  ;;  %v2155_v58 = vadd.f32 %v1929_v44, %v513_v55  ;;  %v675_v35 = vpop.f32.mrf.mxu1  ;;  %v1579_v41 = vpop.f32.mrf.mxu0  ;;  %v2159_v18 = vadd.f32 %v1931_v45, %v1929_v44  ;;  %v2167_v42 = vadd.f32 %v1933_v46, %v1929_v44 }
 0x137   :  { %3043 = vst [vmem:[#allocation45_spill] sm:$0xff] %v2149_v23  ;;  %v767_v30 = vadd.f32 %v766_v38, %v765_v9  ;;  %v768_v36 = vsel %vm752_vm0, %v744_v6, 0.0  ;;  %v2163_v63 = vadd.f32 %v1579_v41, %v1929_v44  ;;  %v2171_v34 = vadd.f32 %v1929_v44, %v1935_v47 }
 0x138   :  { %3045 = vst [vmem:[#allocation47_spill] sm:$0xff] %v2167_v42  ;;  %v730_v43 = vadd.f32 %v714_v26, %v2155_v58  ;;  %v2175_v40 = vadd.f32 %v1929_v44, %v675_v35  ;;  %v1635_v45 = vpop.f32.mrf.mxu1  ;;  %v523_v38 = vpop.f32.mrf.mxu0  ;;  %v2179_v55 = vadd.f32 %v1929_v44, %v1955_v54  ;;  %v747_v9 = vadd.f32 %v731_v37, %v2149_v23 }
 0x139   :  { %3044 = vst [vmem:[#allocation46_spill] sm:$0xff] %v2163_v63  ;;  %3046 = vst [vmem:[#allocation48_spill] sm:$0xff] %v2171_v34  ;;  %v769_v41 = vadd.f32 %v768_v36, %v767_v30  ;;  %v2183_v46 = vadd.f32 %v1929_v44, %v523_v38  ;;  %v770_v47 = vsel %vm752_vm0, %v745_v29, 0.0  ;;  %v733_v26 = vadd.f32 %v717_v62, %v2163_v63 }
 0x13a   :  { %3047 = vst [vmem:[#allocation49_spill] sm:$0xff] %v2175_v40  ;;  %3048 = vst [vmem:[#allocation50_spill] sm:$0xff] %v2179_v55  ;;  %v746_v6 = vadd.f32 %v730_v43, %v2175_v40  ;;  %v2189_v35 = vadd.f32 %v1635_v45, %v1929_v44  ;;  %v685_v33 = vpop.f32.mrf.mxu1  ;;  %v1582_v31 = vpop.f32.mrf.mxu0  ;;  %v719_v37 = vadd.f32 %v2167_v42, %v2159_v18  ;;  %v774_v38 = vsel %vm752_vm0, %v747_v9, 0.0 }
 0x13b   :  { %3049 = vst [vmem:[#allocation51_spill] sm:$0xff] %v2183_v46  ;;  %v771_v28 = vadd.f32 %v770_v47, %v769_v41  ;;  %v732_v54 = vadd.f32 %v716_v56, %v2183_v46  ;;  %v2193_v30 = vadd.f32 %v1929_v44, %v685_v33  ;;  %v2199_v36 = vadd.f32 %v1582_v31, %v1929_v44 }
 0x13c   :  { %3050 = vst [vmem:[#allocation52_spill] sm:$0xff] %v2189_v35  ;;  %v772_v29 = vsel %vm752_vm0, %v746_v6, 0.0  ;;  %v1638_v62 = vpop.f32.mrf.mxu1  ;;  %v533_v43 = vpop.f32.mrf.mxu0  ;;  %v718_v45 = vadd.f32 %v2179_v55, %v2171_v34  ;;  %v749_v33 = vadd.f32 %v733_v26, %v2189_v35 }
 0x13d   :  { %3051 = vst [vmem:[#allocation53_spill] sm:$0xff] %v2199_v36  ;;  %v773_v41 = vadd.f32 %v772_v29, %v771_v28  ;;  %v748_v56 = vadd.f32 %v732_v54, %v2193_v30  ;;  %v735_v47 = vadd.f32 %v719_v37, %v2199_v36  ;;  %v2208_v23 = vadd.f32 %v1638_v62, %v1929_v44 }
 0x13e   :  { %v2211_v31 = vadd.f32 %v1929_v44, %v533_v43  ;;  %v695_v6 = vpop.f32.mrf.mxu1  ;;  %v778_v26 = vsel %vm752_vm0, %v749_v33, 0.0 }
 0x13f   :  { %v775_v63 = vadd.f32 %v774_v38, %v773_v41  ;;  %v776_v40 = vsel %vm752_vm0, %v748_v56, 0.0  ;;  %v2216_v28 = vadd.f32 %v1929_v44, %v695_v6  ;;  %v751_v54 = vadd.f32 %v735_v47, %v2208_v23 }
 0x140   :  { %v734_v46 = vadd.f32 %v718_v45, %v2211_v31 }
 0x141   :  { %v777_v9 = vadd.f32 %v776_v40, %v775_v63  ;;  %v782_v38 = vsel %vm752_vm0, %v751_v54, 0.0 }
 0x142   :  { %v750_v37 = vadd.f32 %v734_v46, %v2216_v28 }
 0x143   :  { %v779_v29 = vadd.f32 %v778_v26, %v777_v9 }
 0x144   :  { %v780_v62 = vsel %vm752_vm0, %v750_v37, 0.0 }
 0x145   :  { %v781_v43 = vadd.f32 %v780_v62, %v779_v29 }
 0x147   :  { %v783_v41 = vadd.f32 %v782_v38, %v781_v43 }
 0x149   :  { %v784_v56 = vrot.slane %v783_v41, 4 }
 0x14b   :  { %v785_v35 = vadd.f32 %v784_v56, %v783_v41 }
 0x14d   :  { %v786_v45 = vrot.slane %v785_v35, 2 }
 0x14f   :  { %v787_v36 = vadd.f32 %v786_v45, %v785_v35 }
 0x151   :  { %v788_v44 = vrot.slane %v787_v36, 1 }
 0x153   :  { %v789_v6 = vadd.f32 %v788_v44, %v787_v36 }
 0x155   :  { %v2223_v63 = vmul.f32 0.001953125, %v789_v6 }
 0x157   :  { %v792_v40 = vsub.f32 %v1944_v50, %v2223_v63  ;;  %v793_v46 = vsub.f32 %v1938_v48, %v2223_v63  ;;  %v794_v33 = vsub.f32 %v1967_v60, %v2223_v63  ;;  %v795_v47 = vsub.f32 %v1950_v52, %v2223_v63 }
 0x158   :  { %v796_v9 = vsub.f32 %v1979_v2, %v2223_v63  ;;  %v797_v35 = vsub.f32 %v1973_v0, %v2223_v63  ;;  %v798_v36 = vsub.f32 %v2007_v15, %v2223_v63  ;;  %v799_v26 = vsub.f32 %v1988_v5, %v2223_v63 }
 0x159   :  { %v800_v54 = vsub.f32 %v2019_v21, %v2223_v63  ;;  %v801_v37 = vsub.f32 %v2013_v17, %v2223_v63  ;;  %v802_v29 = vsub.f32 %v2080_v25, %v2223_v63  ;;  %v803_v62 = vsub.f32 %v2072_v59, %v2223_v63 }
 0x15a   :  { %v804_v43 = vsub.f32 %v2111_v14, %v2223_v63  ;;  %v805_v38 = vsub.f32 %v2099_v39, %v2223_v63  ;;  %v806_v41 = vsub.f32 %v2171_v34, %v2223_v63  ;;  %v807_v56 = vsub.f32 %v2159_v18, %v2223_v63 }
 0x15b   :  { %v808_v45 = vmul.f32 %v792_v40, %v792_v40  ;;  %v809_v44 = vmul.f32 %v793_v46, %v793_v46  ;;  %v810_v6 = vmul.f32 %v794_v33, %v794_v33  ;;  %v811_v17 = vmul.f32 %v795_v47, %v795_v47 }
 0x15c   :  { %v812_v25 = vmul.f32 %v796_v9, %v796_v9  ;;  %v813_v21 = vmul.f32 %v797_v35, %v797_v35  ;;  %v814_v5 = vmul.f32 %v798_v36, %v798_v36  ;;  %v815_v59 = vmul.f32 %v799_v26, %v799_v26 }
 0x15d   :  { %v816_v15 = vmul.f32 %v800_v54, %v800_v54  ;;  %v817_v0 = vmul.f32 %v801_v37, %v801_v37  ;;  %v818_v14 = vmul.f32 %v802_v29, %v802_v29  ;;  %v819_v2 = vmul.f32 %v803_v62, %v803_v62 }
 0x15e   :  { %v2257_v52 = vmul.f32 %v804_v43, %v804_v43  ;;  %v2259_v39 = vmul.f32 %v805_v38, %v805_v38  ;;  %v2261_v34 = vmul.f32 %v806_v41, %v806_v41  ;;  %v2263_v60 = vmul.f32 %v807_v56, %v807_v56 }
 0x15f   :  { %v824_v40 = vsub.f32 %v1947_v51, %v2223_v63  ;;  %v825_v46 = vsub.f32 %v1941_v49, %v2223_v63  ;;  %v826_v33 = vsub.f32 %v1970_v61, %v2223_v63  ;;  %v827_v47 = vsub.f32 %v1953_v53, %v2223_v63 }
 0x160   :  { %v828_v9 = vsub.f32 %v1985_v4, %v2223_v63  ;;  %v829_v35 = vsub.f32 %v1976_v1, %v2223_v63  ;;  %v830_v36 = vsub.f32 %v2010_v16, %v2223_v63  ;;  %v831_v26 = vsub.f32 %v1995_v10, %v2223_v63 }
 0x161   :  { %v832_v54 = vsub.f32 %v2022_v22, %v2223_v63  ;;  %v833_v37 = vsub.f32 %v2016_v20, %v2223_v63  ;;  %v834_v29 = vsub.f32 %v2085_v11, %v2223_v63  ;;  %v835_v62 = vsub.f32 %v2076_v24, %v2223_v63 }
 0x162   :  { %v836_v43 = vsub.f32 %v2119_v19, %v2223_v63  ;;  %v837_v38 = vsub.f32 %v2107_v32, %v2223_v63  ;;  %v838_v41 = vsub.f32 %v2179_v55, %v2223_v63  ;;  %v839_v56 = vsub.f32 %v2167_v42, %v2223_v63 }
 0x163   :  { %v840_v22 = vmul.f32 %v824_v40, %v824_v40  ;;  %v841_v20 = vmul.f32 %v825_v46, %v825_v46  ;;  %v842_v10 = vmul.f32 %v826_v33, %v826_v33  ;;  %v843_v16 = vmul.f32 %v827_v47, %v827_v47 }
 0x164   :  { %v844_v11 = vmul.f32 %v828_v9, %v828_v9  ;;  %v845_v1 = vmul.f32 %v829_v35, %v829_v35  ;;  %v846_v4 = vmul.f32 %v830_v36, %v830_v36  ;;  %v847_v24 = vmul.f32 %v831_v26, %v831_v26 }
 0x165   :  { %v848_v53 = vmul.f32 %v832_v54, %v832_v54  ;;  %v849_v61 = vmul.f32 %v833_v37, %v833_v37  ;;  %v850_v19 = vmul.f32 %v834_v29, %v834_v29  ;;  %v851_v49 = vmul.f32 %v835_v62, %v835_v62 }
 0x166   :  { %v852_v51 = vmul.f32 %v836_v43, %v836_v43  ;;  %v872_v32 = vsub.f32 %v1982_v3, %v2223_v63  ;;  %v873_v55 = vsub.f32 %v1960_v57, %v2223_v63  ;;  %v853_v42 = vmul.f32 %v837_v38, %v837_v38 }
 0x167   :  { %v854_v40 = vmul.f32 %v838_v41, %v838_v41  ;;  %v2301_v46 = vmul.f32 %v839_v56, %v839_v56  ;;  %v856_v33 = vadd.f32 %v840_v22, %v808_v45  ;;  %v857_v47 = vadd.f32 %v841_v20, %v809_v44 }
 0x168   :  { %v858_v9 = vadd.f32 %v842_v10, %v810_v6  ;;  %v859_v35 = vadd.f32 %v843_v16, %v811_v17  ;;  %v874_v36 = vsub.f32 %v2031_v27, %v2223_v63  ;;  %v860_v26 = vadd.f32 %v844_v11, %v812_v25  ;;  %v3055_v6 = vld [vmem:[#allocation34_spill] sm:$0xff] }
 0x169   :  { %v861_v54 = vadd.f32 %v845_v1, %v813_v21  ;;  %v862_v37 = vadd.f32 %v846_v4, %v814_v5  ;;  %v875_v29 = vsub.f32 %v2002_v13, %v2223_v63  ;;  %v888_v62 = vmul.f32 %v872_v32, %v872_v32  ;;  %v3052_v21 = vld [vmem:[#allocation25_spill] sm:$0xff] }
 0x16a   :  { %v889_v43 = vmul.f32 %v873_v55, %v873_v55  ;;  %v920_v38 = vsub.f32 %v1999_v12, %v2223_v63  ;;  %v921_v22 = vsub.f32 %v1992_v7, %v2223_v63  ;;  %v863_v20 = vadd.f32 %v847_v24, %v815_v59  ;;  %v3053_v55 = vld [vmem:[#allocation24_spill] sm:$0xff] }
 0x16b   :  { %v864_v10 = vadd.f32 %v848_v53, %v816_v15  ;;  %v2311_v16 = vadd.f32 %v849_v61, %v817_v0  ;;  %v876_v17 = vsub.f32 %v2056_v8, %v2223_v63  ;;  %v890_v1 = vmul.f32 %v874_v36, %v874_v36  ;;  %v3054_v61 = vld [vmem:[#allocation23_spill] sm:$0xff] }
 0x16c   :  { %v904_v4 = vadd.f32 %v888_v62, %v856_v33  ;;  %v905_v5 = vadd.f32 %v889_v43, %v857_v47  ;;  %v922_v25 = vsub.f32 %v3052_v21, %v2223_v63  ;;  %v2317_v11 = vadd.f32 %v850_v19, %v818_v14  ;;  %v3058_v43 = vld [vmem:[#allocation26_spill] sm:$0xff] }
 0x16d   :  { %v2319_v32 = vadd.f32 %v851_v49, %v819_v2  ;;  %v877_v45 = vsub.f32 %v3053_v55, %v2223_v63  ;;  %v891_v59 = vmul.f32 %v875_v29, %v875_v29  ;;  %v906_v53 = vadd.f32 %v890_v1, %v858_v9  ;;  %v3056_v49 = vld [vmem:[#allocation27_spill] sm:$0xff] }
 0x16e   :  { %v923_v0 = vsub.f32 %v3054_v61, %v2223_v63  ;;  %v936_v15 = vmul.f32 %v920_v38, %v920_v38  ;;  %v937_v24 = vmul.f32 %v921_v22, %v921_v22  ;;  %v2326_v44 = vadd.f32 %v852_v51, %v2257_v52  ;;  %v3057_v51 = vld [vmem:[#allocation28_spill] sm:$0xff] }
 0x16f   :  { %v878_v41 = vsub.f32 %v3055_v6, %v2223_v63  ;;  %v892_v14 = vmul.f32 %v876_v17, %v876_v17  ;;  %v907_v19 = vadd.f32 %v891_v59, %v859_v35  ;;  %v924_v2 = vsub.f32 %v3056_v49, %v2223_v63  ;;  %v3059_v17 = vld [vmem:[#allocation41_spill] sm:$0xff] }
 0x170   :  { %v938_v56 = vmul.f32 %v922_v25, %v922_v25  ;;  %v952_v33 = vadd.f32 %v936_v15, %v904_v4  ;;  %v953_v47 = vadd.f32 %v937_v24, %v905_v5  ;;  %v2333_v9 = vadd.f32 %v853_v42, %v2259_v39  ;;  %v3060_v39 = vld [vmem:[#allocation39_spill] sm:$0xff]  ;;  %v3062_v24 = vld [vmem:[#allocation33_spill] sm:$0xff] }
 0x171   :  { %v2336_v36 = vadd.f32 %v854_v40, %v2261_v34  ;;  %v879_v52 = vsub.f32 %v3057_v51, %v2223_v63  ;;  %v893_v29 = vmul.f32 %v877_v45, %v877_v45  ;;  %v908_v62 = vadd.f32 %v892_v14, %v860_v26  ;;  %v3061_v26 = vld [vmem:[#allocation36_spill] sm:$0xff] }
 0x172   :  { %v925_v35 = vsub.f32 %v3058_v43, %v2223_v63  ;;  %v939_v38 = vmul.f32 %v923_v0, %v923_v0  ;;  %v954_v22 = vadd.f32 %v938_v56, %v906_v53  ;;  %v880_v1 = vsub.f32 %v3059_v17, %v2223_v63 }
 0x173   :  { %v894_v4 = vmul.f32 %v878_v41, %v878_v41  ;;  %v909_v5 = vadd.f32 %v893_v29, %v861_v54  ;;  %v926_v42 = vsub.f32 %v3060_v39, %v2223_v63  ;;  %v940_v34 = vmul.f32 %v924_v2, %v924_v2 }
 0x174   :  { %v955_v40 = vadd.f32 %v939_v38, %v907_v19  ;;  %v968_v25 = vsel %vm752_vm0, %v952_v33, 0.0  ;;  %v969_v45 = vsel %vm752_vm0, %v953_v47, 0.0  ;;  %v881_v59 = vsub.f32 %v3061_v26, %v2223_v63  ;;  %v3063_v47 = vld [vmem:[#allocation43_spill] sm:$0xff] }
 0x175   :  { %v895_v15 = vmul.f32 %v879_v52, %v879_v52  ;;  %v910_v0 = vadd.f32 %v894_v4, %v862_v37  ;;  %v970_v53 = vadd.f32 %v969_v45, %v968_v25  ;;  %v927_v14 = vsub.f32 %v3062_v24, %v2223_v63  ;;  %v3064_v4 = vld [vmem:[#allocation44_spill] sm:$0xff] }
 0x176   :  { %v941_v41 = vmul.f32 %v925_v35, %v925_v35  ;;  %v956_v54 = vadd.f32 %v940_v34, %v908_v62  ;;  %v971_v56 = vsel %vm752_vm0, %v954_v22, 0.0  ;;  %v882_v19 = vsub.f32 %v2155_v58, %v2223_v63  ;;  %v3065_v22 = vld [vmem:[#allocation42_spill] sm:$0xff] }
 0x177   :  { %v896_v2 = vmul.f32 %v880_v1, %v880_v1  ;;  %v911_v33 = vadd.f32 %v895_v15, %v863_v20  ;;  %v972_v29 = vadd.f32 %v971_v56, %v970_v53  ;;  %v928_v38 = vsub.f32 %v3063_v47, %v2223_v63  ;;  %v3066_v15 = vld [vmem:[#allocation51_spill] sm:$0xff] }
 0x178   :  { %v942_v39 = vmul.f32 %v926_v42, %v926_v42  ;;  %v957_v52 = vadd.f32 %v941_v41, %v909_v5  ;;  %v973_v37 = vsel %vm752_vm0, %v955_v40, 0.0  ;;  %v883_v25 = vsub.f32 %v3064_v4, %v2223_v63  ;;  %v3067_v41 = vld [vmem:[#allocation49_spill] sm:$0xff] }
 0x179   :  { %v897_v35 = vmul.f32 %v881_v59, %v881_v59  ;;  %v912_v62 = vadd.f32 %v896_v2, %v864_v10  ;;  %v974_v34 = vadd.f32 %v973_v37, %v972_v29  ;;  %v929_v45 = vsub.f32 %v3065_v22, %v2223_v63  ;;  %v3068_v29 = vld [vmem:[#allocation46_spill] sm:$0xff]  ;;  %v3069_v37 = vld [vmem:[#allocation45_spill] sm:$0xff] }
 0x17a   :  { %v943_v24 = vmul.f32 %v927_v14, %v927_v14  ;;  %v958_v1 = vadd.f32 %v942_v39, %v910_v0  ;;  %v975_v20 = vsel %vm752_vm0, %v956_v54, 0.0  ;;  %v884_v53 = vsub.f32 %v3066_v15, %v2223_v63 }
 0x17b   :  { %v898_v42 = vmul.f32 %v882_v19, %v882_v19  ;;  %v913_v5 = vadd.f32 %v897_v35, %v2311_v16  ;;  %v976_v40 = vadd.f32 %v975_v20, %v974_v34  ;;  %v930_v56 = vsub.f32 %v3067_v41, %v2223_v63 }
 0x17c   :  { %v944_v59 = vmul.f32 %v928_v38, %v928_v38  ;;  %v959_v10 = vadd.f32 %v943_v24, %v911_v33  ;;  %v977_v2 = vsel %vm752_vm0, %v957_v52, 0.0  ;;  %v885_v14 = vsub.f32 %v3068_v29, %v2223_v63 }
 0x17d   :  { %v899_v39 = vmul.f32 %v883_v25, %v883_v25  ;;  %v914_v0 = vadd.f32 %v898_v42, %v2317_v11  ;;  %v978_v54 = vadd.f32 %v977_v2, %v976_v40  ;;  %v931_v19 = vsub.f32 %v3069_v37, %v2223_v63  ;;  %v3070_v42 = vld [vmem:[#allocation53_spill] sm:$0xff] }
 0x17e   :  { %v945_v22 = vmul.f32 %v929_v45, %v929_v45  ;;  %v960_v16 = vadd.f32 %v944_v59, %v912_v62  ;;  %v979_v35 = vsel %vm752_vm0, %v958_v1, 0.0  ;;  %v886_v38 = vsub.f32 %v2211_v31, %v2223_v63  ;;  %v3071_v59 = vld [vmem:[#allocation52_spill] sm:$0xff] }
 0x17f   :  { %v900_v24 = vmul.f32 %v884_v53, %v884_v53  ;;  %v915_v33 = vadd.f32 %v899_v39, %v2319_v32  ;;  %v980_v52 = vadd.f32 %v979_v35, %v978_v54  ;;  %v932_v25 = vsub.f32 %v2193_v30, %v2223_v63 }
 0x180   :  { %v946_v34 = vmul.f32 %v930_v56, %v930_v56  ;;  %v961_v11 = vadd.f32 %v945_v22, %v913_v5  ;;  %v981_v20 = vsel %vm752_vm0, %v959_v10, 0.0  ;;  %v887_v45 = vsub.f32 %v3070_v42, %v2223_v63 }
 0x181   :  { %v901_v62 = vmul.f32 %v885_v14, %v885_v14  ;;  %v916_v1 = vadd.f32 %v900_v24, %v2326_v44  ;;  %v982_v40 = vadd.f32 %v981_v20, %v980_v52  ;;  %v933_v53 = vsub.f32 %v3071_v59, %v2223_v63 }
 0x182   :  { %v947_v2 = vmul.f32 %v931_v19, %v931_v19  ;;  %v962_v32 = vadd.f32 %v946_v34, %v914_v0  ;;  %v983_v39 = vsel %vm752_vm0, %v960_v16, 0.0  ;;  %v871_v56 = vadd.f32 %v2301_v46, %v2263_v60 }
 0x183   :  { %v902_v22 = vmul.f32 %v886_v38, %v886_v38  ;;  %v917_v5 = vadd.f32 %v901_v62, %v2333_v9  ;;  %v984_v10 = vadd.f32 %v983_v39, %v982_v40  ;;  %v934_v14 = vsub.f32 %v2216_v28, %v2223_v63 }
 0x184   :  { %v948_v54 = vmul.f32 %v932_v25, %v932_v25  ;;  %v963_v44 = vadd.f32 %v947_v2, %v915_v33  ;;  %v985_v35 = vsel %vm752_vm0, %v961_v11, 0.0  ;;  %v903_v24 = vmul.f32 %v887_v45, %v887_v45 }
 0x185   :  { %v918_v19 = vadd.f32 %v902_v22, %v2336_v36  ;;  %v986_v0 = vadd.f32 %v985_v35, %v984_v10  ;;  %v935_v16 = vsub.f32 %v2208_v23, %v2223_v63  ;;  %v949_v52 = vmul.f32 %v933_v53, %v933_v53 }
 0x186   :  { %v964_v60 = vadd.f32 %v948_v54, %v916_v1  ;;  %v987_v46 = vsel %vm752_vm0, %v962_v32, 0.0  ;;  %v919_v38 = vadd.f32 %v903_v24, %v871_v56  ;;  %v950_v34 = vmul.f32 %v934_v14, %v934_v14 }
 0x187   :  { %v988_v9 = vadd.f32 %v987_v46, %v986_v0  ;;  %v965_v20 = vadd.f32 %v949_v52, %v917_v5  ;;  %v989_v25 = vsel %vm752_vm0, %v963_v44, 0.0  ;;  %v951_v62 = vmul.f32 %v935_v16, %v935_v16  ;;  %v1006_v16 = vld [vmem:[%s2912_s3] sm:$0x1] }
 0x188   :  { %v966_v11 = vadd.f32 %v950_v34, %v918_v19  ;;  %v991_v45 = vsel %vm752_vm0, %v964_v60, 0.0  ;;  %v1014_v19 = vlaneseq }
 0x189   :  { %v990_v33 = vadd.f32 %v989_v25, %v988_v9  ;;  %v967_v40 = vadd.f32 %v951_v62, %v919_v38  ;;  %v993_v2 = vsel %vm752_vm0, %v965_v20, 0.0  ;;  %v1010_v9 = vld [vmem:[%s2913_s4] sm:$0x1] }
 0x18a   :  { %v995_v1 = vsel %vm752_vm0, %v966_v11, 0.0  ;;  %v1015_v0 = vshrl.u32 %v1014_v19, 7  ;;  %v3072_v62 = vld [vmem:[#allocation9_spill] sm:$0xff]  ;;  %v3083_v19 = vld [vmem:[#allocation35_spill] sm:$0xff] }
 0x18b   :  { %v992_v36 = vadd.f32 %v991_v45, %v990_v33  ;;  %v997_v32 = vsel %vm752_vm0, %v967_v40, 0.0  ;;  %v3073_v45 = vld [vmem:[#allocation7_spill] sm:$0xff]  ;;  %v3074_v40 = vld [vmem:[#allocation13_spill] sm:$0xff] }
 0x18c   :  { %v1016_v52 = vsub.s32 0, %v1015_v0 }
 0x18d   :  { %v994_v39 = vadd.f32 %v993_v2, %v992_v36 }
 0x18f   :  { %v996_v53 = vadd.f32 %v995_v1, %v994_v39  ;;  %v3075_v39 = vld [vmem:[#allocation11_spill] sm:$0xff]  ;;  %v3076_v1 = vld [vmem:[#allocation17_spill] sm:$0xff] }
 0x191   :  { %v998_v56 = vadd.f32 %v997_v32, %v996_v53  ;;  %v3077_v32 = vld [vmem:[#allocation15_spill] sm:$0xff] }
 0x193   :  { %v999_v22 = vrot.slane %v998_v56, 4 }
 0x195   :  { %v1000_v5 = vadd.f32 %v999_v22, %v998_v56  ;;  %v3078_v56 = vld [vmem:[#allocation21_spill] sm:$0xff]  ;;  %v3079_v22 = vld [vmem:[#allocation19_spill] sm:$0xff] }
 0x197   :  { %v1001_v10 = vrot.slane %v1000_v5, 2 }
 0x199   :  { %v1002_v14 = vadd.f32 %v1001_v10, %v1000_v5  ;;  %v3080_v10 = vld [vmem:[#allocation31_spill] sm:$0xff] }
 0x19b   :  { %v1003_v54 = vrot.slane %v1002_v14, 1 }
 0x19d   :  { %v1004_v44 = vadd.f32 %v1003_v54, %v1002_v14  ;;  %v3081_v54 = vld [vmem:[#allocation29_spill] sm:$0xff] }
 0x19f   :  { %v1005_v35 = vmul.f32 0.001953125, %v1004_v44 }
 0x1a1   :  { %v1007_v24 = vadd.f32 1e-05, %v1005_v35  ;;  %v3082_v35 = vld [vmem:[#allocation38_spill] sm:$0xff] }
 0x1a3   :  { %1642 = vrsqrt.f32 %v1007_v24 }
 0x1b0   :  { %v1643_v60 = vpop.eup %1642 }
 0x1b1   :  { %v1009_v46 = vmul.f32 %v1643_v60, %v1006_v16  ;;  %v3084_v16 = vld [vmem:[#allocation48_spill] sm:$0xff] }
 0x1b3   :  { %v1011_v38 = vmul.f32 %v1009_v46, %v2223_v63  ;;  %v2409_v34 = vrot.slane %v1009_v46, %v1016_v52 }
 0x1b5   :  { %v1012_v20 = vsub.f32 %v1010_v9, %v1011_v38  ;;  %v1019_v25 = vmul.f32 %v2409_v34, %v1944_v50  ;;  %v1020_v33 = vmul.f32 %v2409_v34, %v1938_v48  ;;  %v1021_v11 = vmul.f32 %v2409_v34, %v3072_v62  ;;  %v3085_v38 = vld [vmem:[#allocation6_spill] sm:$0xff] }
 0x1b6   :  { %v1022_v36 = vmul.f32 %v2409_v34, %v3073_v45  ;;  %v1023_v2 = vmul.f32 %v2409_v34, %v3074_v40  ;;  %v1024_v63 = vmul.f32 %v2409_v34, %v3075_v39  ;;  %v1025_v53 = vmul.f32 %v2409_v34, %v3076_v1  ;;  %v3086_v45 = vld [vmem:[#allocation5_spill] sm:$0xff]  ;;  %v3087_v39 = vld [vmem:[#allocation10_spill] sm:$0xff] }
 0x1b7   :  { %v1026_v50 = vmul.f32 %v2409_v34, %v3077_v32  ;;  %v1027_v48 = vmul.f32 %v2409_v34, %v3078_v56  ;;  %v1028_v5 = vmul.f32 %v2409_v34, %v3079_v22  ;;  %v1029_v14 = vmul.f32 %v2409_v34, %v3080_v10  ;;  %v3088_v32 = vld [vmem:[#allocation8_spill] sm:$0xff]  ;;  %v3089_v22 = vld [vmem:[#allocation14_spill] sm:$0xff] }
 0x1b8   :  { %v1030_v44 = vmul.f32 %v2409_v34, %v3081_v54  ;;  %v1031_v24 = vmul.f32 %v2409_v34, %v3082_v35  ;;  %v1032_v0 = vmul.f32 %v2409_v34, %v3083_v19  ;;  %v1033_v60 = vmul.f32 %v2409_v34, %v3084_v16  ;;  %v3090_v54 = vld [vmem:[#allocation12_spill] sm:$0xff] }
 0x1b9   :  { %v1034_v46 = vmul.f32 %v2409_v34, %v2159_v18  ;;  %v2443_v9 = vrot.slane %v1012_v20, %v1016_v52  ;;  %v1073_v62 = vmul.f32 %v2409_v34, %v3085_v38  ;;  %v1074_v40 = vmul.f32 %v2409_v34, %v3086_v45 }
 0x1ba   :  { %v1075_v1 = vmul.f32 %v2409_v34, %v3087_v39  ;;  %v1076_v56 = vmul.f32 %v2409_v34, %v3088_v32  ;;  %v1077_v10 = vmul.f32 %v2409_v34, %v3089_v22  ;;  %v1078_v18 = vmul.f32 %v2409_v34, %v3090_v54  ;;  %v3103_v54 = vld [vmem:[#allocation20_spill] sm:$0xff] }
 0x1bb   :  { %v2458_v52 = vadd.f32 %v2443_v9, %v1019_v25  ;;  %v2461_v20 = vadd.f32 %v2443_v9, %v1020_v33  ;;  %v2464_v35 = vadd.f32 %v2443_v9, %v1021_v11  ;;  %v2467_v19 = vadd.f32 %v2443_v9, %v1022_v36 }
 0x1bc   :  { %v2470_v16 = vadd.f32 %v2443_v9, %v1023_v2  ;;  %v2473_v38 = vadd.f32 %v2443_v9, %v1024_v63  ;;  %v2476_v45 = vadd.f32 %v2443_v9, %v1025_v53  ;;  %v2479_v25 = vadd.f32 %v2443_v9, %v1026_v50 }
 0x1bd   :  { %v2482_v33 = vadd.f32 %v2443_v9, %v1027_v48  ;;  %v2485_v11 = vadd.f32 %v2443_v9, %v1028_v5  ;;  %v2488_v36 = vadd.f32 %v2443_v9, %v1029_v14  ;;  %v2491_v2 = vadd.f32 %v2443_v9, %v1030_v44  ;;  %v3100_v5 = vld [vmem:[#allocation18_spill] sm:$0xff] }
 0x1be   :  { %3091 = vst [vmem:[#allocation25_spill] sm:$0xff] %v2479_v25  ;;  %v2494_v63 = vadd.f32 %v2443_v9, %v1031_v24  ;;  %v2497_v53 = vadd.f32 %v2443_v9, %v1032_v0  ;;  %v2500_v50 = vadd.f32 %v2443_v9, %v1033_v60  ;;  %v2503_v48 = vadd.f32 %v2443_v9, %v1034_v46  ;;  %v3101_v60 = vld [vmem:[#allocation16_spill] sm:$0xff]  ;;  %v3105_v44 = vld [vmem:[#allocation30_spill] sm:$0xff] }
 0x1bf   :  { %3092 = vst [vmem:[#allocation24_spill] sm:$0xff] %v2482_v33  ;;  %3093 = vst [vmem:[#allocation23_spill] sm:$0xff] %v2485_v11  ;;  %v1079_v0 = vmul.f32 %v2409_v34, %v3100_v5  ;;  %v1080_v22 = vmul.f32 %v2409_v34, %v3101_v60  ;;  %v3102_v33 = vld [vmem:[#allocation22_spill] sm:$0xff]  ;;  %v1082_v14 = vmul.f32 %v2409_v34, %v3103_v54 }
 0x1c0   :  { %3094 = vst [vmem:[#allocation34_spill] sm:$0xff] %v2488_v36  ;;  %3095 = vst [vmem:[#allocation27_spill] sm:$0xff] %v2491_v2  ;;  %v1081_v46 = vmul.f32 %v2409_v34, %v3102_v33  ;;  %v3104_v2 = vld [vmem:[#allocation32_spill] sm:$0xff]  ;;  %v1084_v24 = vmul.f32 %v2409_v34, %v3105_v44  ;;  %v2542_v54 = vadd.f32 %v1073_v62, %v2443_v9 }
 0x1c1   :  { %3096 = vst [vmem:[#allocation28_spill] sm:$0xff] %v2494_v63  ;;  %3097 = vst [vmem:[#allocation26_spill] sm:$0xff] %v2497_v53  ;;  %v1083_v39 = vmul.f32 %v2409_v34, %v3104_v2  ;;  %v3108_v53 = vld [vmem:[#allocation50_spill] sm:$0xff]  ;;  %v3109_v63 = vld [vmem:[#allocation47_spill] sm:$0xff]  ;;  %v2545_v2 = vadd.f32 %v1074_v40, %v2443_v9  ;;  %v2548_v44 = vadd.f32 %v1075_v1, %v2443_v9 }
 0x1c2   :  { %3098 = vst [vmem:[#allocation41_spill] sm:$0xff] %v2500_v50  ;;  %3099 = vst [vmem:[#allocation36_spill] sm:$0xff] %v2503_v48  ;;  %v3106_v50 = vld [vmem:[#allocation40_spill] sm:$0xff]  ;;  %v3107_v48 = vld [vmem:[#allocation37_spill] sm:$0xff]  ;;  %v1087_v60 = vmul.f32 %v2409_v34, %v3108_v53  ;;  %v1088_v33 = vmul.f32 %v2409_v34, %v3109_v63  ;;  %v2557_v53 = vadd.f32 %v1078_v18, %v2443_v9 }
 0x1c3   :  { %v1085_v32 = vmul.f32 %v2409_v34, %v3106_v50  ;;  %v1086_v5 = vmul.f32 %v2409_v34, %v3107_v48  ;;  %v2551_v50 = vadd.f32 %v1076_v56, %v2443_v9  ;;  %v2554_v48 = vadd.f32 %v1077_v10, %v2443_v9 }
 0x1c4   :  { %v2560_v63 = vadd.f32 %v1079_v0, %v2443_v9  ;;  %v2563_v62 = vadd.f32 %v1080_v22, %v2443_v9  ;;  %v2566_v40 = vadd.f32 %v1081_v46, %v2443_v9  ;;  %v2569_v1 = vadd.f32 %v1082_v14, %v2443_v9 }
 0x1c5   :  { %v2572_v56 = vadd.f32 %v1083_v39, %v2443_v9  ;;  %v2575_v10 = vadd.f32 %v1084_v24, %v2443_v9  ;;  %v2578_v18 = vadd.f32 %v1085_v32, %v2443_v9  ;;  %v2581_v0 = vadd.f32 %v1086_v5, %v2443_v9 }
 0x1c6   :  { %v2584_v22 = vadd.f32 %v1087_v60, %v2443_v9  ;;  %v2587_v46 = vadd.f32 %v1088_v33, %v2443_v9  ;;  %v1121_v5 = vmul.f32 %v2409_v34, %v1982_v3  ;;  %v1122_v25 = vmul.f32 %v2409_v34, %v1960_v57 }
 0x1c7   :  { %v1123_v33 = vmul.f32 %v2409_v34, %v2031_v27  ;;  %v1124_v39 = vmul.f32 %v2409_v34, %v2002_v13  ;;  %v1125_v36 = vmul.f32 %v2409_v34, %v2056_v8  ;;  %v1126_v32 = vmul.f32 %v2409_v34, %v3053_v55 }
 0x1c8   :  { %v1127_v11 = vmul.f32 %v2409_v34, %v3055_v6  ;;  %v1128_v3 = vmul.f32 %v2409_v34, %v3057_v51  ;;  %v1129_v57 = vmul.f32 %v2409_v34, %v3059_v17  ;;  %v1130_v27 = vmul.f32 %v2409_v34, %v3061_v26 }
 0x1c9   :  { %v1131_v13 = vmul.f32 %v2409_v34, %v2155_v58  ;;  %v1132_v8 = vmul.f32 %v2409_v34, %v3064_v4  ;;  %v1133_v55 = vmul.f32 %v2409_v34, %v3066_v15  ;;  %v1134_v6 = vmul.f32 %v2409_v34, %v3068_v29 }
 0x1ca   :  { %v1135_v51 = vmul.f32 %v2409_v34, %v2211_v31  ;;  %v1136_v17 = vmul.f32 %v2409_v34, %v3070_v42  ;;  %v2638_v26 = vadd.f32 %v1121_v5, %v2443_v9  ;;  %v2641_v58 = vadd.f32 %v1122_v25, %v2443_v9 }
 0x1cb   :  { %v2644_v4 = vadd.f32 %v1123_v33, %v2443_v9  ;;  %v2647_v15 = vadd.f32 %v1124_v39, %v2443_v9  ;;  %v2650_v29 = vadd.f32 %v1125_v36, %v2443_v9  ;;  %v2653_v31 = vadd.f32 %v1126_v32, %v2443_v9 }
 0x1cc   :  { %v2656_v42 = vadd.f32 %v1127_v11, %v2443_v9  ;;  %v2659_v5 = vadd.f32 %v1128_v3, %v2443_v9  ;;  %v2662_v25 = vadd.f32 %v1129_v57, %v2443_v9  ;;  %v2665_v33 = vadd.f32 %v1130_v27, %v2443_v9  ;;  %v3121_v27 = vld [vmem:[#allocation33_spill] sm:$0xff] }
 0x1cd   :  { %v2668_v39 = vadd.f32 %v1131_v13, %v2443_v9  ;;  %v2671_v36 = vadd.f32 %v1132_v8, %v2443_v9  ;;  %v2674_v32 = vadd.f32 %v1133_v55, %v2443_v9  ;;  %v2677_v11 = vadd.f32 %v1134_v6, %v2443_v9  ;;  %v3120_v8 = vld [vmem:[#allocation39_spill] sm:$0xff] }
 0x1ce   :  { %3110 = vst [vmem:[#allocation43_spill] sm:$0xff] %v2656_v42  ;;  %3111 = vst [vmem:[#allocation44_spill] sm:$0xff] %v2659_v5  ;;  %v2680_v3 = vadd.f32 %v1135_v51, %v2443_v9  ;;  %v2683_v57 = vadd.f32 %v1136_v17, %v2443_v9  ;;  %v1169_v6 = vmul.f32 %v2409_v34, %v1999_v12  ;;  %v3122_v51 = vld [vmem:[#allocation42_spill] sm:$0xff] }
 0x1cf   :  { %3112 = vst [vmem:[#allocation51_spill] sm:$0xff] %v2662_v25  ;;  %3113 = vst [vmem:[#allocation49_spill] sm:$0xff] %v2665_v33  ;;  %v1170_v60 = vmul.f32 %v2409_v34, %v1992_v7  ;;  %v1171_v17 = vmul.f32 %v2409_v34, %v3052_v21  ;;  %v1172_v13 = vmul.f32 %v2409_v34, %v3054_v61 }
 0x1d0   :  { %3114 = vst [vmem:[#allocation46_spill] sm:$0xff] %v2668_v39  ;;  %3115 = vst [vmem:[#allocation45_spill] sm:$0xff] %v2671_v36  ;;  %v1173_v24 = vmul.f32 %v2409_v34, %v3056_v49  ;;  %v1174_v55 = vmul.f32 %v2409_v34, %v3058_v43  ;;  %v1175_v14 = vmul.f32 %v2409_v34, %v3120_v8 }
 0x1d1   :  { %3116 = vst [vmem:[#allocation53_spill] sm:$0xff] %v2674_v32  ;;  %3117 = vst [vmem:[#allocation52_spill] sm:$0xff] %v2677_v11  ;;  %v1176_v12 = vmul.f32 %v2409_v34, %v3121_v27  ;;  %v1177_v7 = vmul.f32 %v2409_v34, %v3063_v47  ;;  %v1178_v21 = vmul.f32 %v2409_v34, %v3122_v51 }
 0x1d2   :  { %3118 = vst [vmem:[#allocation9_spill] sm:$0xff] %v2680_v3  ;;  %3119 = vst [vmem:[#allocation7_spill] sm:$0xff] %v2683_v57  ;;  %v1179_v61 = vmul.f32 %v2409_v34, %v3067_v41  ;;  %v1180_v49 = vmul.f32 %v2409_v34, %v3069_v37  ;;  %v1181_v43 = vmul.f32 %v2409_v34, %v2193_v30 }
 0x1d3   :  { %v1182_v8 = vmul.f32 %v2409_v34, %v3071_v59  ;;  %v1183_v27 = vmul.f32 %v2409_v34, %v2216_v28  ;;  %v1184_v47 = vmul.f32 %v2409_v34, %v2208_v23  ;;  %v1185_v51 = vadd.f32 %v1169_v6, %v2443_v9 }
 0x1d4   :  { %v1186_v57 = vadd.f32 %v1170_v60, %v2443_v9  ;;  %v1187_v41 = vadd.f32 %v1171_v17, %v2443_v9  ;;  %v1188_v37 = vadd.f32 %v1172_v13, %v2443_v9  ;;  %v1189_v3 = vadd.f32 %v1173_v24, %v2443_v9 }
 0x1d5   :  { %v1190_v30 = vadd.f32 %v1174_v55, %v2443_v9  ;;  %v1191_v59 = vadd.f32 %v1175_v14, %v2443_v9  ;;  %v1192_v11 = vadd.f32 %v1176_v12, %v2443_v9  ;;  %v1193_v28 = vadd.f32 %v1177_v7, %v2443_v9 }
 0x1d6   :  { %v1194_v23 = vadd.f32 %v1178_v21, %v2443_v9  ;;  %v1195_v34 = vadd.f32 %v1179_v61, %v2443_v9  ;;  %v1196_v60 = vadd.f32 %v1180_v49, %v2443_v9  ;;  %v1197_v6 = vadd.f32 %v1181_v43, %v2443_v9 }
 0x1d7   :  { %v1198_v13 = vadd.f32 %v1182_v8, %v2443_v9  ;;  %v1199_v24 = vadd.f32 %v1183_v27, %v2443_v9  ;;  %v1200_v55 = vadd.f32 %v1184_v47, %v2443_v9  ;;  %v1201_v17 = vmax.f32 %v1185_v51, 0.0 }
 0x1d8   :  { %v1202_v14 = vmax.f32 %v1186_v57, 0.0  ;;  %v1203_v32 = vmax.f32 %v1187_v41, 0.0  ;;  %v1204_v12 = vmax.f32 %v1188_v37, 0.0  ;;  %v1205_v36 = vmax.f32 %v1189_v3, 0.0 }
 0x1d9   :  { %v1206_v7 = vmax.f32 %v1190_v30, 0.0  ;;  %v1207_v39 = vmax.f32 %v1191_v59, 0.0  ;;  %v1208_v21 = vmax.f32 %v1192_v11, 0.0  ;;  %v1209_v33 = vmax.f32 %v1193_v28, 0.0 }
 0x1da   :  { %v1210_v61 = vmax.f32 %v1194_v23, 0.0  ;;  %v1211_v25 = vmax.f32 %v1195_v34, 0.0  ;;  %v1212_v49 = vmax.f32 %v1196_v60, 0.0  ;;  %v1213_v5 = vmax.f32 %v1197_v6, 0.0  ;;  %v3138_v6 = vld [vmem:[#allocation25_spill] sm:$0xff] }
 0x1db   :  { %v1214_v43 = vmax.f32 %v1198_v13, 0.0  ;;  %v1215_v42 = vmax.f32 %v1199_v24, 0.0  ;;  %v1216_v8 = vmax.f32 %v1200_v55, 0.0  ;;  %v3123_v27 = vmax.f32 %v2542_v54, 0.0  ;;  %v3141_v24 = vld [vmem:[#allocation24_spill] sm:$0xff] }
 0x1dc   :  { %v3124_v9 = vmax.f32 %v2458_v52, 0.0  ;;  %v3125_v57 = vmax.f32 %v2545_v2, 0.0  ;;  %v3126_v3 = vmax.f32 %v2461_v20, 0.0  ;;  %v3127_v11 = vmax.f32 %v2548_v44, 0.0 }
 0x1dd   :  { %v3128_v41 = vmax.f32 %v2464_v35, 0.0  ;;  %v3129_v30 = vmax.f32 %v2551_v50, 0.0  ;;  %v3130_v59 = vmax.f32 %v2467_v19, 0.0  ;;  %v3131_v54 = vmax.f32 %v2554_v48, 0.0 }
 0x1de   :  { %v1217_v47 = vmax.f32 %v3124_v9, %v3123_v27  ;;  %v1218_v51 = vmax.f32 %v3126_v3, %v3125_v57  ;;  %v3132_v52 = vmax.f32 %v2470_v16, 0.0  ;;  %v3133_v2 = vmax.f32 %v2557_v53, 0.0  ;;  %v3144_v27 = vld [vmem:[#allocation23_spill] sm:$0xff]  ;;  %v3147_v57 = vld [vmem:[#allocation34_spill] sm:$0xff] }
 0x1df   :  { %v1219_v37 = vmax.f32 %v3128_v41, %v3127_v11  ;;  %v1220_v28 = vmax.f32 %v3130_v59, %v3129_v30  ;;  %v3134_v20 = vmax.f32 %v2473_v38, 0.0  ;;  %v3135_v44 = vmax.f32 %v2560_v63, 0.0  ;;  %v3150_v11 = vld [vmem:[#allocation27_spill] sm:$0xff]  ;;  %v3153_v59 = vld [vmem:[#allocation28_spill] sm:$0xff] }
 0x1e0   :  { %v1221_v23 = vmax.f32 %v3132_v52, %v3131_v54  ;;  %v3136_v35 = vmax.f32 %v2476_v45, 0.0  ;;  %v3137_v50 = vmax.f32 %v2563_v62, 0.0  ;;  %v3139_v19 = vmax.f32 %v3138_v6, 0.0 }
 0x1e1   :  { %v1222_v34 = vmax.f32 %v3134_v20, %v3133_v2  ;;  %v3140_v48 = vmax.f32 %v2566_v40, 0.0  ;;  %v3142_v16 = vmax.f32 %v3141_v24, 0.0  ;;  %v3143_v53 = vmax.f32 %v2569_v1, 0.0  ;;  %v3156_v2 = vld [vmem:[#allocation26_spill] sm:$0xff] }
 0x1e2   :  { %v1223_v60 = vmax.f32 %v3136_v35, %v3135_v44  ;;  %v1224_v13 = vmax.f32 %v3139_v19, %v3137_v50  ;;  %v3145_v38 = vmax.f32 %v3144_v27, 0.0  ;;  %v3146_v63 = vmax.f32 %v2572_v56, 0.0  ;;  %v3159_v35 = vld [vmem:[#allocation41_spill] sm:$0xff]  ;;  %v3162_v19 = vld [vmem:[#allocation36_spill] sm:$0xff] }
 0x1e3   :  { %v1225_v55 = vmax.f32 %v3142_v16, %v3140_v48  ;;  %v3148_v45 = vmax.f32 %v3147_v57, 0.0  ;;  %v3149_v62 = vmax.f32 %v2575_v10, 0.0  ;;  %v3151_v41 = vmax.f32 %v3150_v11, 0.0  ;;  %v3170_v11 = vld [vmem:[#allocation43_spill] sm:$0xff] }
 0x1e4   :  { %v1226_v9 = vmax.f32 %v3145_v38, %v3143_v53  ;;  %v3152_v40 = vmax.f32 %v2578_v18, 0.0  ;;  %v3154_v54 = vmax.f32 %v3153_v59, 0.0  ;;  %v3155_v1 = vmax.f32 %v2581_v0, 0.0 }
 0x1e5   :  { %v1227_v3 = vmax.f32 %v3148_v45, %v3146_v63  ;;  %v1228_v30 = vmax.f32 %v3151_v41, %v3149_v62  ;;  %v3157_v20 = vmax.f32 %v3156_v2, 0.0  ;;  %v3158_v56 = vmax.f32 %v2584_v22, 0.0 }
 0x1e6   :  { %v1229_v52 = vmax.f32 %v3154_v54, %v3152_v40  ;;  %v3160_v50 = vmax.f32 %v3159_v35, 0.0  ;;  %v3161_v10 = vmax.f32 %v2587_v46, 0.0  ;;  %v3163_v48 = vmax.f32 %v3162_v19, 0.0  ;;  %v3184_v35 = vld [vmem:[#allocation52_spill] sm:$0xff] }
 0x1e7   :  { %v1230_v44 = vmax.f32 %v3157_v20, %v3155_v1  ;;  %v3164_v18 = vmax.f32 %v2638_v26, 0.0  ;;  %v3165_v53 = vmax.f32 %v2641_v58, 0.0  ;;  %v3166_v0 = vmax.f32 %v2644_v4, 0.0  ;;  %v3172_v26 = vld [vmem:[#allocation44_spill] sm:$0xff]  ;;  %v3174_v58 = vld [vmem:[#allocation51_spill] sm:$0xff]  ;;  %v3176_v4 = vld [vmem:[#allocation49_spill] sm:$0xff] }
 0x1e8   :  { %v1231_v6 = vmax.f32 %v3160_v50, %v3158_v56  ;;  %v1232_v24 = vmax.f32 %v3163_v48, %v3161_v10  ;;  %v3167_v63 = vmax.f32 %v2647_v15, 0.0  ;;  %v3168_v57 = vmax.f32 %v2650_v29, 0.0  ;;  %v3178_v15 = vld [vmem:[#allocation46_spill] sm:$0xff]  ;;  %v3180_v29 = vld [vmem:[#allocation45_spill] sm:$0xff]  ;;  %v3188_v48 = vld [vmem:[#allocation7_spill] sm:$0xff] }
 0x1e9   :  { %v1233_v16 = vmax.f32 %v3164_v18, %v1201_v17  ;;  %v1234_v27 = vmax.f32 %v3165_v53, %v1202_v14  ;;  %v1235_v38 = vmax.f32 %v3166_v0, %v1203_v32  ;;  %v3169_v46 = vmax.f32 %v2653_v31, 0.0  ;;  %v3182_v31 = vld [vmem:[#allocation53_spill] sm:$0xff] }
 0x1ea   :  { %v1236_v22 = vmax.f32 %v3167_v63, %v1204_v12  ;;  %v1237_v45 = vmax.f32 %v3168_v57, %v1205_v36  ;;  %v3171_v41 = vmax.f32 %v3170_v11, 0.0  ;;  %v3173_v17 = vmax.f32 %v3172_v26, 0.0  ;;  %v3186_v10 = vld [vmem:[#allocation9_spill] sm:$0xff] }
 0x1eb   :  { %v1238_v62 = vmax.f32 %v3169_v46, %v1206_v7  ;;  %v3175_v14 = vmax.f32 %v3174_v58, 0.0  ;;  %v3177_v32 = vmax.f32 %v3176_v4, 0.0  ;;  %v3179_v12 = vmax.f32 %v3178_v15, 0.0 }
 0x1ec   :  { %v1239_v40 = vmax.f32 %v3171_v41, %v1207_v39  ;;  %v1240_v59 = vmax.f32 %v3173_v17, %v1208_v21  ;;  %v3181_v36 = vmax.f32 %v3180_v29, 0.0  ;;  %v3183_v7 = vmax.f32 %v3182_v31, 0.0 }
 0x1ed   :  { %v1241_v54 = vmax.f32 %v3175_v14, %v1209_v33  ;;  %v1242_v1 = vmax.f32 %v3177_v32, %v1210_v61  ;;  %v1243_v2 = vmax.f32 %v3179_v12, %v1211_v25  ;;  %v3185_v39 = vmax.f32 %v3184_v35, 0.0 }
 0x1ee   :  { %v1244_v20 = vmax.f32 %v3181_v36, %v1212_v49  ;;  %v1245_v56 = vmax.f32 %v3183_v7, %v1213_v5  ;;  %v3187_v21 = vmax.f32 %v3186_v10, 0.0  ;;  %v3189_v33 = vmax.f32 %v3188_v48, 0.0 }
 0x1ef   :  { %v1246_v50 = vmax.f32 %v3185_v39, %v1214_v43  ;;  %v1249_v53 = vmax.f32 %v1217_v47, %v1233_v16  ;;  %v1250_v61 = vmax.f32 %v1218_v51, %v1234_v27  ;;  %v1251_v0 = vmax.f32 %v1219_v37, %v1235_v38 }
 0x1f0   :  { %v1247_v19 = vmax.f32 %v3187_v21, %v1215_v42  ;;  %v1248_v18 = vmax.f32 %v3189_v33, %v1216_v8  ;;  %v1252_v63 = vmax.f32 %v1220_v28, %v1236_v22  ;;  %v1253_v25 = vmax.f32 %v1221_v23, %v1237_v45 }
 0x1f1   :  { %v1254_v57 = vmax.f32 %v1222_v34, %v1238_v62  ;;  %v1255_v46 = vmax.f32 %v1223_v60, %v1239_v40  ;;  %v1256_v49 = vmax.f32 %v1224_v13, %v1240_v59  ;;  %v1257_v11 = vmax.f32 %v1225_v55, %v1241_v54  ;;  %1265 = vst.msk [vmem:[%s2914_s5] sm:$0xff] %vm752_vm0, %v1249_v53 }
 0x1f2   :  { %v1258_v41 = vmax.f32 %v1226_v9, %v1242_v1  ;;  %1266 = vst.msk [vmem:[%s2914_s5 + $0x8] sm:$0xff] %vm752_vm0, %v1250_v61  ;;  %v1259_v42 = vmax.f32 %v1227_v3, %v1243_v2  ;;  %v1260_v5 = vmax.f32 %v1228_v30, %v1244_v20  ;;  %v1261_v43 = vmax.f32 %v1229_v52, %v1245_v56 }
 0x1f3   :  { %v1262_v8 = vmax.f32 %v1230_v44, %v1246_v50  ;;  %1267 = vst.msk [vmem:[%s2914_s5 + $0x10] sm:$0xff] %vm752_vm0, %v1251_v0  ;;  %1268 = vst.msk [vmem:[%s2914_s5 + $0x18] sm:$0xff] %vm752_vm0, %v1252_v63  ;;  %v1263_v47 = vmax.f32 %v1231_v6, %v1247_v19  ;;  %v1264_v51 = vmax.f32 %v1232_v24, %v1248_v18 }
 0x1f4   :  { %1269 = vst.msk [vmem:[%s2914_s5 + $0x20] sm:$0xff] %vm752_vm0, %v1253_v25  ;;  %1270 = vst.msk [vmem:[%s2914_s5 + $0x28] sm:$0xff] %vm752_vm0, %v1254_v57 }
 0x1f5   :  { %1271 = vst.msk [vmem:[%s2914_s5 + $0x30] sm:$0xff] %vm752_vm0, %v1255_v46  ;;  %1272 = vst.msk [vmem:[%s2914_s5 + $0x38] sm:$0xff] %vm752_vm0, %v1256_v49 }
 0x1f6   :  { %1273 = vst.msk [vmem:[%s2914_s5 + $0x40] sm:$0xff] %vm752_vm0, %v1257_v11  ;;  %1274 = vst.msk [vmem:[%s2914_s5 + $0x48] sm:$0xff] %vm752_vm0, %v1258_v41 }
 0x1f7   :  { %1275 = vst.msk [vmem:[%s2914_s5 + $0x50] sm:$0xff] %vm752_vm0, %v1259_v42  ;;  %1276 = vst.msk [vmem:[%s2914_s5 + $0x58] sm:$0xff] %vm752_vm0, %v1260_v5 }
 0x1f8   :  { %1277 = vst.msk [vmem:[%s2914_s5 + $0x60] sm:$0xff] %vm752_vm0, %v1261_v43  ;;  %1278 = vst.msk [vmem:[%s2914_s5 + $0x68] sm:$0xff] %vm752_vm0, %v1262_v8 }
 0x1f9   :  { %1279 = vst.msk [vmem:[%s2914_s5 + $0x70] sm:$0xff] %vm752_vm0, %v1263_v47  ;;  %1280 = vst.msk [vmem:[%s2914_s5 + $0x78] sm:$0xff] %vm752_vm0, %v1264_v51 }
 0x1fa   :  { %1285 = vsyncpa [#allocation3], 1 }

</bundles_post_ra>
